<compile_context>
chip_gen: v6e
topology: v6e:2x2x1
jax: 0.10.0
libtpu: 0.0.40
codegen_flags: <defaults>
</compile_context>

<pallas_src>
import jax
import jax.numpy as jnp
from jax.experimental import pallas as pl
from jax.experimental.pallas import tpu as pltpu

NUM_GROUPS = 16       # Norm_layer('GN', C) -> nn.GroupNorm(16, C)
GN_EPS = 1e-5         # PyTorch GroupNorm default eps
ACTIVATION = "ReLU"   # Activation_layer('ReLU')
TILE_P_MAX = 2048     # target output-voxel rows per tile (multiple of 128)
VMEM_TILE_BUDGET = 24 * 1024 * 1024  # double-buffered tile budget (v7x-safe)


def _round_up(a, b):
    return ((a + b - 1) // b) * b


# ---------------------------------------------------------------------------
# Pass 1: conv matmul (MXU) + per-channel sum / sum-of-squares accumulation.
# ---------------------------------------------------------------------------
def conv_stats_kernel(p_ref, w_ref, y_ref, stat_ref):
    # p_ref   : (1, CK, TP)   bf16 im2col tile (lane axis = output voxels)
    # w_ref   : (Cout, CK)    bf16 conv weight
    # y_ref   : (1, Cout, TP) f32 raw conv output tile (lane-dense store)
    # stat_ref: (1, Cout, 2)  f32 accumulator, resident across the P-tile axis
    pt = pl.program_id(1)

    y = jnp.dot(w_ref[...], p_ref[0], preferred_element_type=jnp.float32)  # (Cout, TP)
    y_ref[0] = y

    ch_sum = jnp.sum(y, axis=1, keepdims=True)          # (Cout, 1)
    ch_sq = jnp.sum(y * y, axis=1, keepdims=True)       # (Cout, 1)
    tile_stats = jnp.concatenate([ch_sum, ch_sq], axis=1)  # (Cout, 2)

    @pl.when(pt == 0)
    def _init():
        stat_ref[...] = jnp.zeros_like(stat_ref)

    stat_ref[...] = stat_ref[...] + tile_stats[None]


# ---------------------------------------------------------------------------
# Pass 2: GroupNorm (precomputed per-channel scale/bias) + activation.
# ---------------------------------------------------------------------------
def gn_act_kernel(y_ref, scale_ref, bias_ref, out_ref):
    # y_ref: (1, Cout, TP) f32 ; scale_ref/bias_ref: (1, Cout, 1) f32
    out = y_ref[0] * scale_ref[0] + bias_ref[0]
    if ACTIVATION == "ReLU":
        out = jnp.maximum(out, 0.0)
    else:  # LeakyReLU(0.01)
        out = jnp.where(out >= 0.0, out, 0.01 * out)
    out_ref[0] = out.astype(out_ref.dtype)


# ---------------------------------------------------------------------------
# Plain-JAX glue: im2col (transposed layout) and weight standardization.
# ---------------------------------------------------------------------------
def _extract_patches(x, ksize, stride, padding, dilation):
    """im2col for NCDHW input; returns (N, Cin*K, Do*Ho*Wo) and output dims."""
    N, Cin, D, H, W = x.shape
    kd, kh, kw = ksize
    sd, sh, sw = stride
    pd, ph, pw = padding
    dd, dh, dw = dilation
    xp = jnp.pad(x, ((0, 0), (0, 0), (pd, pd), (ph, ph), (pw, pw)))
    Do = (D + 2 * pd - dd * (kd - 1) - 1) // sd + 1
    Ho = (H + 2 * ph - dh * (kh - 1) - 1) // sh + 1
    Wo = (W + 2 * pw - dw * (kw - 1) - 1) // sw + 1
    slabs = []
    for iz in range(kd):
        for iy in range(kh):
            for ix in range(kw):
                sl = xp[:, :,
                        iz * dd: iz * dd + sd * (Do - 1) + 1: sd,
                        iy * dh: iy * dh + sh * (Ho - 1) + 1: sh,
                        ix * dw: ix * dw + sw * (Wo - 1) + 1: sw]
                slabs.append(sl)
    pat = jnp.stack(slabs, axis=2)                     # (N, Cin, K, Do, Ho, Wo)
    # CK ordered Cin-major then (kd,kh,kw) == weight.reshape(Cout, Cin*K) order;
    # P ordered D-major -> matches the final NCDHW reshape (no transpose).
    return pat.reshape(N, Cin * kd * kh * kw, Do * Ho * Wo), (Do, Ho, Wo)


def _standardize_weight(weight):
    """Conv3d_wd transform: mean-subtract, divide by unbiased std (+1e-12)."""
    Cout = weight.shape[0]
    wm = weight.mean(axis=(1, 2, 3, 4), keepdims=True)
    wc = weight - wm
    var = jnp.var(wc.reshape(Cout, -1), axis=1, ddof=1)  # torch.var default: unbiased
    std = jnp.sqrt(var + 1e-12).reshape(Cout, 1, 1, 1, 1)
    return wc / std


def _pick_tile_p(P, CK, Cout):
    tp = TILE_P_MAX
    # double-buffered bf16 patch tile + double-buffered f32 y tile within budget
    while tp > 128 and (2 * tp * CK * 2 + 2 * tp * Cout * 4) > VMEM_TILE_BUDGET:
        tp //= 2
    return min(tp, _round_up(P, 128))


def conv3d_block(x, weight, gamma, beta, *, stride=(1, 1, 1), padding=(0, 0, 0),
                 dilation=(1, 1, 1), weight_std=False):
    """Forward of Conv3dBlock. x: (N, Cin, D, H, W) NCDHW; returns NCDHW f32."""
    N, Cin, D, H, W = x.shape
    Cout = weight.shape[0]
    ksize = tuple(weight.shape[2:])
    assert Cout % NUM_GROUPS == 0, "GroupNorm(16, C) requires C % 16 == 0"
    cpg = Cout // NUM_GROUPS

    if weight_std:
        weight = _standardize_weight(weight)

    # bf16 matmul operands (f32 accumulation in-kernel); cast x before im2col
    # so the inflated patches array is materialized in bf16 (halves HBM traffic).
    patches, (Do, Ho, Wo) = _extract_patches(x.astype(jnp.bfloat16), ksize,
                                             stride, padding, dilation)
    P = Do * Ho * Wo
    CK = patches.shape[1]
    wmat = weight.reshape(Cout, CK).astype(jnp.bfloat16)       # (Cout, CK)

    tp = _pick_tile_p(P, CK, Cout)
    P_pad = _round_up(P, tp)
    if P_pad > P:   # zero cols: contribute 0 to sums; trimmed after pass 2
        patches = jnp.pad(patches, ((0, 0), (0, 0), (0, P_pad - P)))
    n_pt = P_pad // tp

    # ---- pass 1: conv + per-channel stats --------------------------------
    flops1 = int(2 * N * P_pad * CK * Cout)
    bytes1 = int(N * CK * P_pad * 2 + Cout * CK * 2
                 + N * Cout * P_pad * 4 + N * Cout * 2 * 4)
    y, stats = pl.pallas_call(
        conv_stats_kernel,
        out_shape=(jax.ShapeDtypeStruct((N, Cout, P_pad), jnp.float32),
                   jax.ShapeDtypeStruct((N, Cout, 2), jnp.float32)),
        grid=(N, n_pt),
        in_specs=[
            pl.BlockSpec((1, CK, tp), lambda n, p: (n, 0, p)),
            pl.BlockSpec((Cout, CK), lambda n, p: (0, 0)),
        ],
        out_specs=(
            pl.BlockSpec((1, Cout, tp), lambda n, p: (n, 0, p)),
            pl.BlockSpec((1, Cout, 2), lambda n, p: (n, 0, 0)),
        ),
        compiler_params=pltpu.CompilerParams(
            dimension_semantics=("parallel", "arbitrary"),
            vmem_limit_bytes=32 * 1024 * 1024),
        cost_estimate=pl.CostEstimate(flops=flops1, transcendentals=0,
                                      bytes_accessed=bytes1),
    )(patches, wmat)

    # ---- tiny XLA glue: fold full-P group stats into per-channel scale/bias
    count = jnp.float32(P * cpg)                      # true voxel count
    g_sum = stats[:, :, 0].reshape(N, NUM_GROUPS, cpg).sum(-1)
    g_sq = stats[:, :, 1].reshape(N, NUM_GROUPS, cpg).sum(-1)
    g_mean = g_sum / count
    g_var = g_sq / count - g_mean * g_mean            # biased var (GN semantics)
    g_rstd = jax.lax.rsqrt(g_var + GN_EPS)
    mean_c = jnp.repeat(g_mean, cpg, axis=1)          # (N, Cout)
    rstd_c = jnp.repeat(g_rstd, cpg, axis=1)
    scale_c = rstd_c * gamma.reshape(1, Cout)
    bias_c = beta.reshape(1, Cout) - mean_c * scale_c
    scale3 = scale_c[:, :, None].astype(jnp.float32)  # (N, Cout, 1)
    bias3 = bias_c[:, :, None].astype(jnp.float32)

    # ---- pass 2: normalize + affine + activation --------------------------
    bytes2 = int(2 * N * Cout * P_pad * 4 + 2 * N * Cout * 4)
    out = pl.pallas_call(
        gn_act_kernel,
        out_shape=jax.ShapeDtypeStruct((N, Cout, P_pad), jnp.float32),
        grid=(N, n_pt),
        in_specs=[
            pl.BlockSpec((1, Cout, tp), lambda n, p: (n, 0, p)),
            pl.BlockSpec((1, Cout, 1), lambda n, p: (n, 0, 0)),
            pl.BlockSpec((1, Cout, 1), lambda n, p: (n, 0, 0)),
        ],
        out_specs=pl.BlockSpec((1, Cout, tp), lambda n, p: (n, 0, p)),
        compiler_params=pltpu.CompilerParams(
            dimension_semantics=("parallel", "parallel"),
            vmem_limit_bytes=32 * 1024 * 1024),
        cost_estimate=pl.CostEstimate(flops=int(3 * N * Cout * P_pad),
                                      transcendentals=0, bytes_accessed=bytes2),
    )(y, scale3, bias3)

    if P_pad > P:
        out = out[:, :, :P]
    # (N, Cout, P) is already NCDHW-ordered: reshape only, no transpose.
    return out.reshape(N, Cout, Do, Ho, Wo)


def _reference(x, weight, gamma, beta, *, stride, padding, dilation, weight_std):
    if weight_std:
        weight = _standardize_weight(weight)
    y = jax.lax.conv_general_dilated(
        x, weight, window_strides=stride, padding=[(p, p) for p in padding],
        rhs_dilation=dilation, dimension_numbers=("NCDHW", "OIDHW", "NCDHW"))
    N, C, D, H, W = y.shape
    yg = y.reshape(N, NUM_GROUPS, -1)
    mean = yg.mean(axis=2, keepdims=True)
    var = yg.var(axis=2, keepdims=True)  # biased, matches GroupNorm
    yn = ((yg - mean) / jnp.sqrt(var + GN_EPS)).reshape(N, C, D, H, W)
    out = yn * gamma.reshape(1, C, 1, 1, 1) + beta.reshape(1, C, 1, 1, 1)
    return jnp.maximum(out, 0.0)


if __name__ == "__main__":
    # Conv3dBlock(in=4, out=32, norm='GN', act='ReLU', k=3, stride=1, pad=1, weight_std=True)
    key = jax.random.PRNGKey(0)
    kx, kw, kg, kb = jax.random.split(key, 4)
    N, Cin, Cout, S = 2, 4, 32, 16
    stride, padding, dilation = (1, 1, 1), (1, 1, 1), (1, 1, 1)
    weight_std = True

    x = jax.random.normal(kx, (N, Cin, S, S, S), dtype=jnp.float32)
    weight = 0.1 * jax.random.normal(kw, (Cout, Cin, 3, 3, 3), dtype=jnp.float32)
    gamma = 1.0 + 0.05 * jax.random.normal(kg, (Cout,), dtype=jnp.float32)
    beta = 0.05 * jax.random.normal(kb, (Cout,), dtype=jnp.float32)

    out = conv3d_block(x, weight, gamma, beta, stride=stride, padding=padding,
                       dilation=dilation, weight_std=weight_std)
    out = jax.block_until_ready(out)

    ref = _reference(x, weight, gamma, beta, stride=stride, padding=padding,
                     dilation=dilation, weight_std=weight_std)
    assert out.shape == ref.shape == (N, Cout, S, S, S)
    err = float(jnp.max(jnp.abs(out - ref)))
    # bf16 matmul operands (f32 accumulation) vs f32 reference -> bf16-level tolerance.
    assert jnp.allclose(out, ref, atol=3e-2, rtol=3e-2), err
    print("KERNEL_OK")
</pallas_src>

<mosaic_0001>
module attributes {stable_mosaic.version = 11 : i64} {
  func.func @conv_stats_kernel(%arg0: i32, %arg1: i32, %arg2: memref<1x108x2048xbf16, #tpu.memory_space<vmem>>, %arg3: memref<32x108xbf16, #tpu.memory_space<vmem>>, %arg4: memref<1x32x2048xf32, #tpu.memory_space<vmem>>, %arg5: memref<1x32x2xf32, #tpu.memory_space<vmem>>) attributes {dimension_semantics = [#tpu.dimension_semantics<parallel>, #tpu.dimension_semantics<arbitrary>], iteration_bounds = array<i64: 2, 2>, scalar_prefetch = 0 : i64, scratch_operands = 0 : i64, tpu.core_type = #tpu.core_type<tc>, window_params = [{transform_indices = @transform_0, window_bounds = array<i64: 1, 108, 2048>}, {pipeline_mode = #tpu.pipeline_mode<synchronous>, transform_indices = @transform_1, window_bounds = array<i64: 32, 108>}, {transform_indices = @transform_2, window_bounds = array<i64: 1, 32, 2048>}, {transform_indices = @transform_3, window_bounds = array<i64: 1, 32, 2>}]} {
    %c0 = arith.constant 0 : index
    %c0_0 = arith.constant 0 : index
    %0 = vector.load %arg3[%c0, %c0_0] : memref<32x108xbf16, #tpu.memory_space<vmem>>, vector<32x108xbf16>
    %c0_1 = arith.constant 0 : index
    %c0_2 = arith.constant 0 : index
    %c0_3 = arith.constant 0 : index
    %1 = vector.load %arg2[%c0_1, %c0_2, %c0_3] : memref<1x108x2048xbf16, #tpu.memory_space<vmem>>, vector<1x108x2048xbf16>
    %2 = vector.shape_cast %1 : vector<1x108x2048xbf16> to vector<108x2048xbf16>
    %cst = arith.constant dense<0.000000e+00> : vector<32x2048xf32>
    %3 = tpu.matmul %0, %2, %cst {dimension_numbers = #tpu.dot_dimension_numbers<[1], [0], [0], [1], [0, 0, 1, 1], [], []>} : vector<32x108xbf16>, vector<108x2048xbf16>, vector<32x2048xf32> -> vector<32x2048xf32>
    %c0_4 = arith.constant 0 : index
    %c0_5 = arith.constant 0 : index
    %c0_6 = arith.constant 0 : index
    %4 = vector.load %arg4[%c0_4, %c0_5, %c0_6] : memref<1x32x2048xf32, #tpu.memory_space<vmem>>, vector<1x32x2048xf32>
    %5 = vector.shape_cast %4 : vector<1x32x2048xf32> to vector<32x2048xf32>
    %6 = vector.shape_cast %3 : vector<32x2048xf32> to vector<1x32x2048xf32>
    tpu.vector_store %arg4[%c0_4, %c0_5, %c0_6], %6 {strides = array<i32>} : memref<1x32x2048xf32, #tpu.memory_space<vmem>>, vector<1x32x2048xf32>,
    %cst_7 = arith.constant dense<0.000000e+00> : vector<32xf32>
    %7 = vector.multi_reduction <add>, %3, %cst_7 [1] : vector<32x2048xf32> to vector<32xf32>
    %8 = vector.shape_cast %7 : vector<32xf32> to vector<32x1xf32>
    %9 = arith.mulf %3, %3 : vector<32x2048xf32>
    %cst_8 = arith.constant dense<0.000000e+00> : vector<32xf32>
    %10 = vector.multi_reduction <add>, %9, %cst_8 [1] : vector<32x2048xf32> to vector<32xf32>
    %11 = vector.shape_cast %10 : vector<32xf32> to vector<32x1xf32>
    %12 = tpu.concatenate %8, %11 in 1 : vector<32x1xf32>, vector<32x1xf32> -> vector<32x2xf32>
    %c0_i32 = arith.constant 0 : i32
    %13 = arith.cmpi eq, %arg1, %c0_i32 : i32
    %14 = arith.extui %13 : i1 to i32
    %c0_i32_9 = arith.constant 0 : i32
    %15 = arith.cmpi ne, %14, %c0_i32_9 : i32
    scf.if %15 {
      %cst_16 = arith.constant 0.000000e+00 : f32
      %20 = vector.broadcast %cst_16 : f32 to vector<1x32x2xf32>
      %c0_17 = arith.constant 0 : index
      %c0_18 = arith.constant 0 : index
      %c0_19 = arith.constant 0 : index
      %21 = vector.load %arg5[%c0_17, %c0_18, %c0_19] : memref<1x32x2xf32, #tpu.memory_space<vmem>>, vector<1x32x2xf32>
      tpu.vector_store %arg5[%c0_17, %c0_18, %c0_19], %20 {strides = array<i32>} : memref<1x32x2xf32, #tpu.memory_space<vmem>>, vector<1x32x2xf32>,
    } else {
    }
    %c0_10 = arith.constant 0 : index
    %c0_11 = arith.constant 0 : index
    %c0_12 = arith.constant 0 : index
    %16 = vector.load %arg5[%c0_10, %c0_11, %c0_12] : memref<1x32x2xf32, #tpu.memory_space<vmem>>, vector<1x32x2xf32>
    %17 = vector.shape_cast %12 : vector<32x2xf32> to vector<1x32x2xf32>
    %18 = arith.addf %16, %17 : vector<1x32x2xf32>
    %c0_13 = arith.constant 0 : index
    %c0_14 = arith.constant 0 : index
    %c0_15 = arith.constant 0 : index
    %19 = vector.load %arg5[%c0_13, %c0_14, %c0_15] : memref<1x32x2xf32, #tpu.memory_space<vmem>>, vector<1x32x2xf32>
    tpu.vector_store %arg5[%c0_13, %c0_14, %c0_15], %18 {strides = array<i32>} : memref<1x32x2xf32, #tpu.memory_space<vmem>>, vector<1x32x2xf32>,
    return
  }
  func.func @transform_0(%arg0: i32, %arg1: i32) -> (i32, i32, i32) {
    %c0_i32 = arith.constant 0 : i32
    %c0_i32_0 = arith.constant 0 : i32
    return %arg0, %c0_i32, %arg1 : i32, i32, i32
  }
  func.func @transform_1(%arg0: i32, %arg1: i32) -> (i32, i32) {
    %c0_i32 = arith.constant 0 : i32
    %c0_i32_0 = arith.constant 0 : i32
    %c0_i32_1 = arith.constant 0 : i32
    return %c0_i32, %c0_i32_0 : i32, i32
  }
  func.func @transform_2(%arg0: i32, %arg1: i32) -> (i32, i32, i32) {
    %c0_i32 = arith.constant 0 : i32
    %c0_i32_0 = arith.constant 0 : i32
    return %arg0, %c0_i32, %arg1 : i32, i32, i32
  }
  func.func @transform_3(%arg0: i32, %arg1: i32) -> (i32, i32, i32) {
    %c0_i32 = arith.constant 0 : i32
    %c0_i32_0 = arith.constant 0 : i32
    %c0_i32_1 = arith.constant 0 : i32
    return %arg0, %c0_i32, %c0_i32_0 : i32, i32, i32
  }
}

</mosaic_0001>

<bundles_post_ra>
// kernel: tpu_custom_call.1
= control target key start
LH: loop header
LB: loop body
LE: loop exit
PB: predicated region body
PF: predicated region fallthrough
CT: control target
= control target key end

     0   :  { %9 = vsyncpa [#allocation4], 0  ;;  %s3244_s0 = inlined_call_operand.vmem [shape: bf16[2,108,4096], index: 0, kind: input, shape index: {}]   ;;  %s3245_s1 = inlined_call_operand.vmem [shape: bf16[32,108], index: 1, kind: input, shape index: {}]   ;;  %s3246_s2 = inlined_call_operand.hbm [shape: f32[2,32,4096], index: 2, kind: output, shape index: {0}]   ;;  %s3247_s3 = inlined_call_operand.vmem [shape: f32[2,32,2], index: 3, kind: output, shape index: {1}]  }
   0x1   :  { %11 = vsyncpa [#allocation4 + $0x1], 0  ;;  %s2377_s12 = smov 0   ;;  %s2379_s13 = smov 0  }
   0x2   :  { %s2381_s14 = smov 0   ;;  %s2383_s15 = smov 0  }
   0x3   :  { %s2385_s16 = smov 0   ;;  %s2387_s17 = smov 0  }
   0x4   :  { %s2389_s18 = smov 0   ;;  %s2391_s19 = smov 0  }
   0x5 LB: > { %s2020_s20 = sadd.s32 4294967295, %s2349_s19   ;;  %s2021_s21 = sadd.s32 4294967294, %s2349_s19   ;;  %s2349_s19 = sphi %s2391_s19, %s17_s19   ;;  %s2345_s18 = sphi %s2389_s18, %s3257_s18   ;;  %s2341_s17 = sphi %s2387_s17, %s3256_s17   ;;  %s2337_s16 = sphi %s2385_s16, %s3255_s16   ;;  %s2333_s15 = sphi %s2383_s15, %s3254_s15   ;;  %s2329_s14 = sphi %s2381_s14, %s3253_s14   ;;  %s2325_s13 = sphi %s2379_s13, %s3252_s13   ;;  %s2321_s12 = sphi %s2377_s12, %s3251_s12  }
   0x6   : > { %s26_s22 = sadd.s32 1, %s2341_s17  ;;  %s29_s23 = sadd.s32 1, %s2345_s18 }
   0x7   : > { %p27_p0 = scmp.ge.s32.totalorder %s26_s22, 2  ;;  %p45_p1 = scmp.ne.s32.totalorder %s2329_s14, %s2325_s13 }
   0x8   : > { %p46_p2 = scmp.eq.s32.totalorder %s2349_s19, 0  ;;  %p98_p5 = scmp.eq.s32.totalorder %s2020_s20, 3 }
   0x9   : > { %s3259_s22 = smov (%p27_p0, %s26_s22), 0  ;;  %s3261_s23 = smov (!%p27_p0, %s29_s23), %s2345_s18 }
   0xa   : > { %s34_s24 = ssub.s32 %s2341_s17, %s3259_s22  ;;  %p2429_p3 = por %p46_p2, %p45_p1 }
   0xb   : > { %p31_p4 = scmp.ge.s32.totalorder %s3261_s23, 2  ;;  %p103_p6 = scmp.ne.s32.totalorder %s2325_s13, %s2321_s12 }
   0xc   : > { %p104_p7 = scmp.eq.s32.totalorder %s2021_s21, 3  ;;  %p2437_p8 = por %p98_p5, %p45_p1 }
   0xd   : > { %s3263_s23 = smov (%p31_p4, %s3261_s23), 0  ;;  %s38_s30 = sadd.s32 1, %s2329_s14 }
   0xe   : > { %p2441_p9 = por %p104_p7, %p103_p6  ;;  %s33_s28 = ssub.s32 %s2345_s18, %s3263_s23 }
   0xf   : > { %s35_s29 = sor.u32 %s34_s24, %s33_s28  ;;  %p2023_p11 = scmp.ge.s32.totalorder %s2349_s19, 4 }
  0x10   : > { %p36_p10 = scmp.eq.s32.totalorder %s35_s29, 0 }
  0x11   : > { %149 = sbr.rel (%p2023_p11) target bundleno = 86 (0x56), region = 20 }
  0x12   : > { %s2449_s4 = scalar_select %p36_p10, %s2329_s14, %s38_s30  }
  0x16   : > { %152 = sbr.rel (!%p2429_p3) target bundleno = 86 (0x56), region = 24  ;;  %s154_s5 = sand.u32 (%p2429_p3), 1, %s2329_s14  }
  0x17   : > { %s2176_s6 = smul.u32 (%p2429_p3), 896, %s154_s5  ;;  %s2024_s7 = sshll.u32 (%p2429_p3), %s2341_s17, 4 }
  0x18   : > { %s2177_s8 = smul.u32 (%p2429_p3), 448, %s2345_s18 }
  0x19   : > { %s2465_s24 = scalar_lea.vmem (%p2429_p3), [#allocation2], %s2176_s6 }
  0x1a   : > { %s159_s9 = sadd.s32 (%p2429_p3), %s2177_s8, %s2024_s7 }
  0x1b   : > { %s2025_s10 = sshll.u32 %s159_s9, 2 }
  0x1c   : > { %s2460_s21 = scalar_lea.vmem %s3244_s0, %s2025_s10 }
  0x1d   : > { %v174_v0 = vld [vmem:[%s2460_s21] sm:$0xff]  ;;  %v176_v1 = vld [vmem:[%s2460_s21 + $0x8] sm:$0xff]  ;;  %v178_v2 = vld [vmem:[%s2460_s21 + $0x10] sm:$0xff] }
  0x1e   : > { %175 = vst [vmem:[%s2465_s24] sm:$0xff] %v174_v0  ;;  %177 = vst [vmem:[%s2465_s24 + $0x8] sm:$0xff] %v176_v1  ;;  %v180_v3 = vld [vmem:[%s2460_s21 + $0x18] sm:$0xff]  ;;  %v182_v4 = vld [vmem:[%s2460_s21 + $0x20] sm:$0xff] }
  0x1f   : > { %179 = vst [vmem:[%s2465_s24 + $0x10] sm:$0xff] %v178_v2  ;;  %v184_v5 = vld [vmem:[%s2460_s21 + $0x28] sm:$0xff]  ;;  %181 = vst [vmem:[%s2465_s24 + $0x18] sm:$0xff] %v180_v3  ;;  %v186_v6 = vld [vmem:[%s2460_s21 + $0x30] sm:$0xff] }
  0x20   : > { %183 = vst [vmem:[%s2465_s24 + $0x20] sm:$0xff] %v182_v4  ;;  %185 = vst [vmem:[%s2465_s24 + $0x28] sm:$0xff] %v184_v5  ;;  %v188_v7 = vld [vmem:[%s2460_s21 + $0x38] sm:$0xff]  ;;  %v190_v8 = vld [vmem:[%s2460_s21 + $0x80] sm:$0xff] }
  0x21   : > { %187 = vst [vmem:[%s2465_s24 + $0x30] sm:$0xff] %v186_v6  ;;  %189 = vst [vmem:[%s2465_s24 + $0x38] sm:$0xff] %v188_v7  ;;  %v192_v9 = vld [vmem:[%s2460_s21 + $0x88] sm:$0xff]  ;;  %v194_v10 = vld [vmem:[%s2460_s21 + $0x90] sm:$0xff] }
  0x22   : > { %191 = vst [vmem:[%s2465_s24 + $0x40] sm:$0xff] %v190_v8  ;;  %v196_v11 = vld [vmem:[%s2460_s21 + $0x98] sm:$0xff]  ;;  %193 = vst [vmem:[%s2465_s24 + $0x48] sm:$0xff] %v192_v9  ;;  %v198_v12 = vld [vmem:[%s2460_s21 + $0xa0] sm:$0xff] }
  0x23   : > { %195 = vst [vmem:[%s2465_s24 + $0x50] sm:$0xff] %v194_v10  ;;  %197 = vst [vmem:[%s2465_s24 + $0x58] sm:$0xff] %v196_v11  ;;  %v200_v13 = vld [vmem:[%s2460_s21 + $0xa8] sm:$0xff]  ;;  %v202_v14 = vld [vmem:[%s2460_s21 + $0xb0] sm:$0xff] }
  0x24   : > { %199 = vst [vmem:[%s2465_s24 + $0x60] sm:$0xff] %v198_v12  ;;  %201 = vst [vmem:[%s2465_s24 + $0x68] sm:$0xff] %v200_v13  ;;  %v204_v15 = vld [vmem:[%s2460_s21 + $0xb8] sm:$0xff]  ;;  %v206_v16 = vld [vmem:[%s2460_s21 + $0x100] sm:$0xff] }
  0x25   : > { %203 = vst [vmem:[%s2465_s24 + $0x70] sm:$0xff] %v202_v14  ;;  %v208_v17 = vld [vmem:[%s2460_s21 + $0x108] sm:$0xff]  ;;  %205 = vst [vmem:[%s2465_s24 + $0x78] sm:$0xff] %v204_v15  ;;  %v210_v18 = vld [vmem:[%s2460_s21 + $0x110] sm:$0xff] }
  0x26   : > { %207 = vst [vmem:[%s2465_s24 + $0x80] sm:$0xff] %v206_v16  ;;  %209 = vst [vmem:[%s2465_s24 + $0x88] sm:$0xff] %v208_v17  ;;  %v212_v19 = vld [vmem:[%s2460_s21 + $0x118] sm:$0xff]  ;;  %v214_v20 = vld [vmem:[%s2460_s21 + $0x120] sm:$0xff] }
  0x27   : > { %211 = vst [vmem:[%s2465_s24 + $0x90] sm:$0xff] %v210_v18  ;;  %213 = vst [vmem:[%s2465_s24 + $0x98] sm:$0xff] %v212_v19  ;;  %v216_v21 = vld [vmem:[%s2460_s21 + $0x128] sm:$0xff]  ;;  %v218_v22 = vld [vmem:[%s2460_s21 + $0x130] sm:$0xff] }
  0x28   : > { %215 = vst [vmem:[%s2465_s24 + $0xa0] sm:$0xff] %v214_v20  ;;  %v220_v23 = vld [vmem:[%s2460_s21 + $0x138] sm:$0xff]  ;;  %217 = vst [vmem:[%s2465_s24 + $0xa8] sm:$0xff] %v216_v21  ;;  %v222_v24 = vld [vmem:[%s2460_s21 + $0x180] sm:$0xff] }
  0x29   : > { %219 = vst [vmem:[%s2465_s24 + $0xb0] sm:$0xff] %v218_v22  ;;  %221 = vst [vmem:[%s2465_s24 + $0xb8] sm:$0xff] %v220_v23  ;;  %v224_v25 = vld [vmem:[%s2460_s21 + $0x188] sm:$0xff]  ;;  %v226_v26 = vld [vmem:[%s2460_s21 + $0x190] sm:$0xff] }
  0x2a   : > { %223 = vst [vmem:[%s2465_s24 + $0xc0] sm:$0xff] %v222_v24  ;;  %225 = vst [vmem:[%s2465_s24 + $0xc8] sm:$0xff] %v224_v25  ;;  %v228_v27 = vld [vmem:[%s2460_s21 + $0x198] sm:$0xff]  ;;  %v230_v28 = vld [vmem:[%s2460_s21 + $0x1a0] sm:$0xff] }
  0x2b   : > { %227 = vst [vmem:[%s2465_s24 + $0xd0] sm:$0xff] %v226_v26  ;;  %v232_v29 = vld [vmem:[%s2460_s21 + $0x1a8] sm:$0xff]  ;;  %229 = vst [vmem:[%s2465_s24 + $0xd8] sm:$0xff] %v228_v27  ;;  %v234_v30 = vld [vmem:[%s2460_s21 + $0x1b0] sm:$0xff] }
  0x2c   : > { %231 = vst [vmem:[%s2465_s24 + $0xe0] sm:$0xff] %v230_v28  ;;  %233 = vst [vmem:[%s2465_s24 + $0xe8] sm:$0xff] %v232_v29  ;;  %v236_v31 = vld [vmem:[%s2460_s21 + $0x1b8] sm:$0xff]  ;;  %v238_v32 = vld [vmem:[%s2460_s21 + $0x200] sm:$0xff] }
  0x2d   : > { %235 = vst [vmem:[%s2465_s24 + $0xf0] sm:$0xff] %v234_v30  ;;  %237 = vst [vmem:[%s2465_s24 + $0xf8] sm:$0xff] %v236_v31  ;;  %v240_v33 = vld [vmem:[%s2460_s21 + $0x208] sm:$0xff]  ;;  %v242_v34 = vld [vmem:[%s2460_s21 + $0x210] sm:$0xff] }
  0x2e   : > { %239 = vst [vmem:[%s2465_s24 + $0x100] sm:$0xff] %v238_v32  ;;  %v244_v35 = vld [vmem:[%s2460_s21 + $0x218] sm:$0xff]  ;;  %241 = vst [vmem:[%s2465_s24 + $0x108] sm:$0xff] %v240_v33  ;;  %v246_v36 = vld [vmem:[%s2460_s21 + $0x220] sm:$0xff] }
  0x2f   : > { %243 = vst [vmem:[%s2465_s24 + $0x110] sm:$0xff] %v242_v34  ;;  %245 = vst [vmem:[%s2465_s24 + $0x118] sm:$0xff] %v244_v35  ;;  %v248_v37 = vld [vmem:[%s2460_s21 + $0x228] sm:$0xff]  ;;  %v250_v38 = vld [vmem:[%s2460_s21 + $0x230] sm:$0xff] }
  0x30   : > { %247 = vst [vmem:[%s2465_s24 + $0x120] sm:$0xff] %v246_v36  ;;  %249 = vst [vmem:[%s2465_s24 + $0x128] sm:$0xff] %v248_v37  ;;  %v252_v39 = vld [vmem:[%s2460_s21 + $0x238] sm:$0xff]  ;;  %v254_v40 = vld [vmem:[%s2460_s21 + $0x280] sm:$0xff] }
  0x31   : > { %251 = vst [vmem:[%s2465_s24 + $0x130] sm:$0xff] %v250_v38  ;;  %v256_v41 = vld [vmem:[%s2460_s21 + $0x288] sm:$0xff]  ;;  %253 = vst [vmem:[%s2465_s24 + $0x138] sm:$0xff] %v252_v39  ;;  %v258_v42 = vld [vmem:[%s2460_s21 + $0x290] sm:$0xff] }
  0x32   : > { %255 = vst [vmem:[%s2465_s24 + $0x140] sm:$0xff] %v254_v40  ;;  %257 = vst [vmem:[%s2465_s24 + $0x148] sm:$0xff] %v256_v41  ;;  %v260_v43 = vld [vmem:[%s2460_s21 + $0x298] sm:$0xff]  ;;  %v262_v44 = vld [vmem:[%s2460_s21 + $0x2a0] sm:$0xff] }
  0x33   : > { %259 = vst [vmem:[%s2465_s24 + $0x150] sm:$0xff] %v258_v42  ;;  %261 = vst [vmem:[%s2465_s24 + $0x158] sm:$0xff] %v260_v43  ;;  %v264_v45 = vld [vmem:[%s2460_s21 + $0x2a8] sm:$0xff]  ;;  %v266_v46 = vld [vmem:[%s2460_s21 + $0x2b0] sm:$0xff] }
  0x34   : > { %263 = vst [vmem:[%s2465_s24 + $0x160] sm:$0xff] %v262_v44  ;;  %v268_v47 = vld [vmem:[%s2460_s21 + $0x2b8] sm:$0xff]  ;;  %265 = vst [vmem:[%s2465_s24 + $0x168] sm:$0xff] %v264_v45  ;;  %v270_v48 = vld [vmem:[%s2460_s21 + $0x300] sm:$0xff] }
  0x35   : > { %267 = vst [vmem:[%s2465_s24 + $0x170] sm:$0xff] %v266_v46  ;;  %269 = vst [vmem:[%s2465_s24 + $0x178] sm:$0xff] %v268_v47  ;;  %v272_v49 = vld [vmem:[%s2460_s21 + $0x308] sm:$0xff]  ;;  %v274_v50 = vld [vmem:[%s2460_s21 + $0x310] sm:$0xff] }
  0x36   : > { %271 = vst [vmem:[%s2465_s24 + $0x180] sm:$0xff] %v270_v48  ;;  %273 = vst [vmem:[%s2465_s24 + $0x188] sm:$0xff] %v272_v49  ;;  %v276_v51 = vld [vmem:[%s2460_s21 + $0x318] sm:$0xff]  ;;  %v278_v52 = vld [vmem:[%s2460_s21 + $0x320] sm:$0xff] }
  0x37   : > { %275 = vst [vmem:[%s2465_s24 + $0x190] sm:$0xff] %v274_v50  ;;  %v280_v53 = vld [vmem:[%s2460_s21 + $0x328] sm:$0xff]  ;;  %277 = vst [vmem:[%s2465_s24 + $0x198] sm:$0xff] %v276_v51  ;;  %v282_v54 = vld [vmem:[%s2460_s21 + $0x330] sm:$0xff] }
  0x38   : > { %279 = vst [vmem:[%s2465_s24 + $0x1a0] sm:$0xff] %v278_v52  ;;  %281 = vst [vmem:[%s2465_s24 + $0x1a8] sm:$0xff] %v280_v53  ;;  %v284_v55 = vld [vmem:[%s2460_s21 + $0x338] sm:$0xff]  ;;  %v286_v56 = vld [vmem:[%s2460_s21 + $0x380] sm:$0xff] }
  0x39   : > { %283 = vst [vmem:[%s2465_s24 + $0x1b0] sm:$0xff] %v282_v54  ;;  %285 = vst [vmem:[%s2465_s24 + $0x1b8] sm:$0xff] %v284_v55  ;;  %v288_v57 = vld [vmem:[%s2460_s21 + $0x388] sm:$0xff]  ;;  %v290_v58 = vld [vmem:[%s2460_s21 + $0x390] sm:$0xff] }
  0x3a   : > { %287 = vst [vmem:[%s2465_s24 + $0x1c0] sm:$0xff] %v286_v56  ;;  %v292_v59 = vld [vmem:[%s2460_s21 + $0x398] sm:$0xff]  ;;  %289 = vst [vmem:[%s2465_s24 + $0x1c8] sm:$0xff] %v288_v57  ;;  %v294_v60 = vld [vmem:[%s2460_s21 + $0x3a0] sm:$0xff] }
  0x3b   : > { %291 = vst [vmem:[%s2465_s24 + $0x1d0] sm:$0xff] %v290_v58  ;;  %293 = vst [vmem:[%s2465_s24 + $0x1d8] sm:$0xff] %v292_v59  ;;  %v296_v61 = vld [vmem:[%s2460_s21 + $0x3a8] sm:$0xff]  ;;  %v298_v62 = vld [vmem:[%s2460_s21 + $0x3b0] sm:$0xff] }
  0x3c   : > { %295 = vst [vmem:[%s2465_s24 + $0x1e0] sm:$0xff] %v294_v60  ;;  %297 = vst [vmem:[%s2465_s24 + $0x1e8] sm:$0xff] %v296_v61  ;;  %v300_v63 = vld [vmem:[%s2460_s21 + $0x3b8] sm:$0xff]  ;;  %v302_v0 = vld [vmem:[%s2460_s21 + $0x400] sm:$0xff] }
  0x3d   : > { %299 = vst [vmem:[%s2465_s24 + $0x1f0] sm:$0xff] %v298_v62  ;;  %v304_v1 = vld [vmem:[%s2460_s21 + $0x408] sm:$0xff]  ;;  %301 = vst [vmem:[%s2465_s24 + $0x1f8] sm:$0xff] %v300_v63  ;;  %v306_v2 = vld [vmem:[%s2460_s21 + $0x410] sm:$0xff] }
  0x3e   : > { %303 = vst [vmem:[%s2465_s24 + $0x200] sm:$0xff] %v302_v0  ;;  %305 = vst [vmem:[%s2465_s24 + $0x208] sm:$0xff] %v304_v1  ;;  %v308_v3 = vld [vmem:[%s2460_s21 + $0x418] sm:$0xff]  ;;  %v310_v4 = vld [vmem:[%s2460_s21 + $0x420] sm:$0xff] }
  0x3f   : > { %307 = vst [vmem:[%s2465_s24 + $0x210] sm:$0xff] %v306_v2  ;;  %309 = vst [vmem:[%s2465_s24 + $0x218] sm:$0xff] %v308_v3  ;;  %v312_v5 = vld [vmem:[%s2460_s21 + $0x428] sm:$0xff]  ;;  %v314_v6 = vld [vmem:[%s2460_s21 + $0x430] sm:$0xff] }
  0x40   : > { %311 = vst [vmem:[%s2465_s24 + $0x220] sm:$0xff] %v310_v4  ;;  %v316_v7 = vld [vmem:[%s2460_s21 + $0x438] sm:$0xff]  ;;  %313 = vst [vmem:[%s2465_s24 + $0x228] sm:$0xff] %v312_v5  ;;  %v318_v8 = vld [vmem:[%s2460_s21 + $0x480] sm:$0xff] }
  0x41   : > { %315 = vst [vmem:[%s2465_s24 + $0x230] sm:$0xff] %v314_v6  ;;  %317 = vst [vmem:[%s2465_s24 + $0x238] sm:$0xff] %v316_v7  ;;  %v320_v9 = vld [vmem:[%s2460_s21 + $0x488] sm:$0xff]  ;;  %v322_v10 = vld [vmem:[%s2460_s21 + $0x490] sm:$0xff] }
  0x42   : > { %319 = vst [vmem:[%s2465_s24 + $0x240] sm:$0xff] %v318_v8  ;;  %321 = vst [vmem:[%s2465_s24 + $0x248] sm:$0xff] %v320_v9  ;;  %v324_v11 = vld [vmem:[%s2460_s21 + $0x498] sm:$0xff]  ;;  %v326_v12 = vld [vmem:[%s2460_s21 + $0x4a0] sm:$0xff] }
  0x43   : > { %323 = vst [vmem:[%s2465_s24 + $0x250] sm:$0xff] %v322_v10  ;;  %v328_v13 = vld [vmem:[%s2460_s21 + $0x4a8] sm:$0xff]  ;;  %325 = vst [vmem:[%s2465_s24 + $0x258] sm:$0xff] %v324_v11  ;;  %v330_v14 = vld [vmem:[%s2460_s21 + $0x4b0] sm:$0xff] }
  0x44   : > { %327 = vst [vmem:[%s2465_s24 + $0x260] sm:$0xff] %v326_v12  ;;  %329 = vst [vmem:[%s2465_s24 + $0x268] sm:$0xff] %v328_v13  ;;  %v332_v15 = vld [vmem:[%s2460_s21 + $0x4b8] sm:$0xff]  ;;  %v334_v16 = vld [vmem:[%s2460_s21 + $0x500] sm:$0xff] }
  0x45   : > { %331 = vst [vmem:[%s2465_s24 + $0x270] sm:$0xff] %v330_v14  ;;  %333 = vst [vmem:[%s2465_s24 + $0x278] sm:$0xff] %v332_v15  ;;  %v336_v17 = vld [vmem:[%s2460_s21 + $0x508] sm:$0xff]  ;;  %v338_v18 = vld [vmem:[%s2460_s21 + $0x510] sm:$0xff] }
  0x46   : > { %335 = vst [vmem:[%s2465_s24 + $0x280] sm:$0xff] %v334_v16  ;;  %v340_v19 = vld [vmem:[%s2460_s21 + $0x518] sm:$0xff]  ;;  %337 = vst [vmem:[%s2465_s24 + $0x288] sm:$0xff] %v336_v17  ;;  %v342_v20 = vld [vmem:[%s2460_s21 + $0x520] sm:$0xff] }
  0x47   : > { %339 = vst [vmem:[%s2465_s24 + $0x290] sm:$0xff] %v338_v18  ;;  %341 = vst [vmem:[%s2465_s24 + $0x298] sm:$0xff] %v340_v19  ;;  %v344_v21 = vld [vmem:[%s2460_s21 + $0x528] sm:$0xff]  ;;  %v346_v22 = vld [vmem:[%s2460_s21 + $0x530] sm:$0xff] }
  0x48   : > { %343 = vst [vmem:[%s2465_s24 + $0x2a0] sm:$0xff] %v342_v20  ;;  %345 = vst [vmem:[%s2465_s24 + $0x2a8] sm:$0xff] %v344_v21  ;;  %v348_v23 = vld [vmem:[%s2460_s21 + $0x538] sm:$0xff]  ;;  %v350_v24 = vld [vmem:[%s2460_s21 + $0x580] sm:$0xff] }
  0x49   : > { %347 = vst [vmem:[%s2465_s24 + $0x2b0] sm:$0xff] %v346_v22  ;;  %v352_v25 = vld [vmem:[%s2460_s21 + $0x588] sm:$0xff]  ;;  %349 = vst [vmem:[%s2465_s24 + $0x2b8] sm:$0xff] %v348_v23  ;;  %v354_v26 = vld [vmem:[%s2460_s21 + $0x590] sm:$0xff] }
  0x4a   : > { %351 = vst [vmem:[%s2465_s24 + $0x2c0] sm:$0xff] %v350_v24  ;;  %353 = vst [vmem:[%s2465_s24 + $0x2c8] sm:$0xff] %v352_v25  ;;  %v356_v27 = vld [vmem:[%s2460_s21 + $0x598] sm:$0xff]  ;;  %v358_v28 = vld [vmem:[%s2460_s21 + $0x5a0] sm:$0xff] }
  0x4b   : > { %355 = vst [vmem:[%s2465_s24 + $0x2d0] sm:$0xff] %v354_v26  ;;  %357 = vst [vmem:[%s2465_s24 + $0x2d8] sm:$0xff] %v356_v27  ;;  %v360_v29 = vld [vmem:[%s2460_s21 + $0x5a8] sm:$0xff]  ;;  %v362_v30 = vld [vmem:[%s2460_s21 + $0x5b0] sm:$0xff] }
  0x4c   : > { %359 = vst [vmem:[%s2465_s24 + $0x2e0] sm:$0xff] %v358_v28  ;;  %v364_v31 = vld [vmem:[%s2460_s21 + $0x5b8] sm:$0xff]  ;;  %361 = vst [vmem:[%s2465_s24 + $0x2e8] sm:$0xff] %v360_v29  ;;  %v366_v32 = vld [vmem:[%s2460_s21 + $0x600] sm:$0xff] }
  0x4d   : > { %363 = vst [vmem:[%s2465_s24 + $0x2f0] sm:$0xff] %v362_v30  ;;  %365 = vst [vmem:[%s2465_s24 + $0x2f8] sm:$0xff] %v364_v31  ;;  %v368_v33 = vld [vmem:[%s2460_s21 + $0x608] sm:$0xff]  ;;  %v370_v34 = vld [vmem:[%s2460_s21 + $0x610] sm:$0xff] }
  0x4e   : > { %367 = vst [vmem:[%s2465_s24 + $0x300] sm:$0xff] %v366_v32  ;;  %369 = vst [vmem:[%s2465_s24 + $0x308] sm:$0xff] %v368_v33  ;;  %v372_v35 = vld [vmem:[%s2460_s21 + $0x618] sm:$0xff]  ;;  %v374_v36 = vld [vmem:[%s2460_s21 + $0x620] sm:$0xff] }
  0x4f   : > { %371 = vst [vmem:[%s2465_s24 + $0x310] sm:$0xff] %v370_v34  ;;  %v376_v37 = vld [vmem:[%s2460_s21 + $0x628] sm:$0xff]  ;;  %373 = vst [vmem:[%s2465_s24 + $0x318] sm:$0xff] %v372_v35  ;;  %v378_v38 = vld [vmem:[%s2460_s21 + $0x630] sm:$0xff] }
  0x50   : > { %375 = vst [vmem:[%s2465_s24 + $0x320] sm:$0xff] %v374_v36  ;;  %377 = vst [vmem:[%s2465_s24 + $0x328] sm:$0xff] %v376_v37  ;;  %v380_v39 = vld [vmem:[%s2460_s21 + $0x638] sm:$0xff]  ;;  %v382_v40 = vld [vmem:[%s2460_s21 + $0x680] sm:$0xff] }
  0x51   : > { %379 = vst [vmem:[%s2465_s24 + $0x330] sm:$0xff] %v378_v38  ;;  %381 = vst [vmem:[%s2465_s24 + $0x338] sm:$0xff] %v380_v39  ;;  %v384_v41 = vld [vmem:[%s2460_s21 + $0x688] sm:$0xff]  ;;  %v386_v42 = vld [vmem:[%s2460_s21 + $0x690] sm:$0xff] }
  0x52   : > { %383 = vst [vmem:[%s2465_s24 + $0x340] sm:$0xff] %v382_v40  ;;  %v388_v43 = vld [vmem:[%s2460_s21 + $0x698] sm:$0xff]  ;;  %385 = vst [vmem:[%s2465_s24 + $0x348] sm:$0xff] %v384_v41  ;;  %v390_v44 = vld [vmem:[%s2460_s21 + $0x6a0] sm:$0xff] }
  0x53   : > { %387 = vst [vmem:[%s2465_s24 + $0x350] sm:$0xff] %v386_v42  ;;  %389 = vst [vmem:[%s2465_s24 + $0x358] sm:$0xff] %v388_v43  ;;  %v392_v45 = vld [vmem:[%s2460_s21 + $0x6a8] sm:$0xff]  ;;  %v394_v46 = vld [vmem:[%s2460_s21 + $0x6b0] sm:$0xff] }
  0x54   : > { %391 = vst [vmem:[%s2465_s24 + $0x360] sm:$0xff] %v390_v44  ;;  %393 = vst [vmem:[%s2465_s24 + $0x368] sm:$0xff] %v392_v45  ;;  %v396_v47 = vld [vmem:[%s2460_s21 + $0x6b8] sm:$0xff] }
  0x55   : > { %395 = vst [vmem:[%s2465_s24 + $0x370] sm:$0xff] %v394_v46  ;;  %397 = vst [vmem:[%s2465_s24 + $0x378] sm:$0xff] %v396_v47 }
  0x56 PF: > { %p2026_p12 = scmp.ge.s32.totalorder %s2349_s19, 1  ;;  %p402_p13 = scmp.lt.s32.totalorder %s2349_s19, 5 }
  0x58   : > { %p403_p0 = pnand %p2026_p12, %p402_p13 }
  0x59   : > { %s2691_s25 = sand.u32 (!%p403_p0), 1, %s2325_s13   ;;  %p439_p1 = scmp.lt.s32.totalorder (!%p403_p0), %s2337_s16, 1 }
  0x5a   : > { %406 = sbr.rel (%p403_p0) target bundleno = 599 (0x257), region = 47  ;;  %s2027_s21 = sshll.u32 (!%p403_p0), %s2691_s25, 9 }
  0x5b   : > { %s2178_s28 = smul.u32 (!%p403_p0), 896, %s2691_s25  ;;  %s2892_s24 = scalar_lea.vmem (!%p403_p0), [#allocation3], %s2027_s21 }
  0x5c   : > { %p2168_p2 = scmp.ne.s32.totalorder (!%p403_p0), %s2333_s15, 0 }
  0x5d   : > { %s2698_s5 = scalar_lea.vmem (!%p403_p0), [#allocation2], %s2178_s28 }
  0x5f   : > { %v2351_v48 = vmov 0   ;;  %s440_s29 = scalar_select %p439_p1, %s2337_s16, 1  ;;  %v545_v49 = vld [vmem:[%s2698_s5 + $0x300] sm:$0xff]  ;;  %vm1122_vm0 = vcmask 1045504   ;;  %v546_v51 = vld [vmem:[%s2698_s5 + $0x308] sm:$0xff]  ;;  %v547_v41 = vld [vmem:[%s2698_s5 + $0x310] sm:$0xff] }
  0x60   : > { %1203 = vmatprep.mubr.bf16.mxu0 %v2351_v48  ;;  %1256 = vmatprep.mubr.bf16.mxu1 %v2351_v48  ;;  %v553_v50 = vld [vmem:[%s2698_s5 + $0x340] sm:$0x33]  ;;  %v554_v53 = vld [vmem:[%s2698_s5 + $0x348] sm:$0x33]  ;;  %v555_v42 = vld [vmem:[%s2698_s5 + $0x350] sm:$0x33] }
  0x61   : > { %s2175_s30 = sshll.u32 %s440_s29, 5  ;;  %v2129_v52 = vcombine.high %v545_v49, %v553_v50  ;;  %v2128_v54 = vcombine.low %v545_v49, %v553_v50  ;;  %v529_v55 = vld [vmem:[%s2698_s5 + $0x280] sm:$0xff]  ;;  %v2131_v57 = vcombine.high %v546_v51, %v554_v53  ;;  %v2130_v58 = vcombine.low %v546_v51, %v554_v53  ;;  %v530_v60 = vld [vmem:[%s2698_s5 + $0x288] sm:$0xff]  ;;  %v548_v43 = vld [vmem:[%s2698_s5 + $0x318] sm:$0xff] }
  0x62   : > { %s2706_s8 = scalar_lea.vmem %s3247_s3, %s2175_s30  ;;  %v537_v56 = vld [vmem:[%s2698_s5 + $0x2c0] sm:$0xff]  ;;  %v538_v61 = vld [vmem:[%s2698_s5 + $0x2c8] sm:$0xff]  ;;  %v556_v44 = vld [vmem:[%s2698_s5 + $0x358] sm:$0x33]  ;;  %v2133_v47 = vcombine.high %v547_v41, %v555_v42  ;;  %v2132_v49 = vcombine.low %v547_v41, %v555_v42  ;;  %vm1115_vm1 = vcmask 883712   ;;  %vm1859_vm2 = vcmask 7168  }
  0x63   : > { %v2113_v59 = vcombine.high %v529_v55, %v537_v56  ;;  %v513_v62 = vld [vmem:[%s2698_s5 + $0x200] sm:$0xff]  ;;  %2144 = vmatprep.subr.msk.bf16.mxu0 %vm1122_vm0, %v2129_v52  ;;  %v1124_v63 = vsel %vm1122_vm0, %v2128_v54, 0  ;;  %v2115_v0 = vcombine.high %v530_v60, %v538_v61  ;;  %v514_v2 = vld [vmem:[%s2698_s5 + $0x208] sm:$0xff]  ;;  %2147 = vmatprep.subr.msk.bf16.mxu1 %vm1122_vm0, %v2131_v57  ;;  %v1130_v4 = vsel %vm1122_vm0, %v2130_v58, 0  ;;  %v531_v52 = vld [vmem:[%s2698_s5 + $0x290] sm:$0xff] }
  0x64   : > { %v521_v1 = vld [vmem:[%s2698_s5 + $0x240] sm:$0xff]  ;;  %v522_v3 = vld [vmem:[%s2698_s5 + $0x248] sm:$0xff]  ;;  %1174 = vmatpush1.bf16.msra.mxu0 %v1124_v63  ;;  %v2112_v5 = vcombine.low %v529_v55, %v537_v56  ;;  %1227 = vmatpush1.bf16.msra.mxu1 %v1130_v4  ;;  %v2114_v6 = vcombine.low %v530_v60, %v538_v61  ;;  %v2135_v50 = vcombine.high %v548_v43, %v556_v44  ;;  %v539_v53 = vld [vmem:[%s2698_s5 + $0x2d0] sm:$0xff]  ;;  %v1136_v57 = vsel %vm1122_vm0, %v2132_v49, 0 }
  0x65   : > { %1175 = vmatprep.subr.bf16.mxu0 %v2113_v59  ;;  %v2097_v7 = vcombine.high %v513_v62, %v521_v1  ;;  %1228 = vmatprep.subr.bf16.mxu1 %v2115_v0  ;;  %v2099_v8 = vcombine.high %v514_v2, %v522_v3  ;;  %v497_v9 = vld [vmem:[%s2698_s5 + $0x180] sm:$0xff]  ;;  %v498_v11 = vld [vmem:[%s2698_s5 + $0x188] sm:$0xff]  ;;  %v2096_v13 = vcombine.low %v513_v62, %v521_v1  ;;  %v532_v55 = vld [vmem:[%s2698_s5 + $0x298] sm:$0xff] }
  0x66   : > { %v505_v10 = vld [vmem:[%s2698_s5 + $0x1c0] sm:$0xff]  ;;  %v506_v12 = vld [vmem:[%s2698_s5 + $0x1c8] sm:$0xff]  ;;  %v2098_v14 = vcombine.low %v514_v2, %v522_v3  ;;  %v2134_v51 = vcombine.low %v548_v43, %v556_v44  ;;  %v540_v56 = vld [vmem:[%s2698_s5 + $0x2d8] sm:$0xff]  ;;  %v2117_v58 = vcombine.high %v531_v52, %v539_v53  ;;  %v2116_v1 = vcombine.low %v531_v52, %v539_v53 }
  0x67   : > { %v2081_v15 = vcombine.high %v497_v9, %v505_v10  ;;  %v2083_v16 = vcombine.high %v498_v11, %v506_v12  ;;  %v481_v17 = vld [vmem:[%s2698_s5 + $0x100] sm:$0xff]  ;;  %v482_v19 = vld [vmem:[%s2698_s5 + $0x108] sm:$0xff]  ;;  %v2080_v21 = vcombine.low %v497_v9, %v505_v10  ;;  %v2082_v22 = vcombine.low %v498_v11, %v506_v12  ;;  %v515_v61 = vld [vmem:[%s2698_s5 + $0x210] sm:$0xff] }
  0x68   : > { %1176 = vmatpush1.bf16.msra.mxu0 %v2112_v5  ;;  %1229 = vmatpush1.bf16.msra.mxu1 %v2114_v6  ;;  %v489_v18 = vld [vmem:[%s2698_s5 + $0x140] sm:$0xff]  ;;  %v490_v20 = vld [vmem:[%s2698_s5 + $0x148] sm:$0xff]  ;;  %v1142_v59 = vsel %vm1122_vm0, %v2134_v51, 0  ;;  %v2119_v60 = vcombine.high %v532_v55, %v540_v56  ;;  %v523_v62 = vld [vmem:[%s2698_s5 + $0x250] sm:$0xff]  ;;  %v2118_v2 = vcombine.low %v532_v55, %v540_v56 }
  0x69   : > { %1177 = vmatprep.subr.bf16.mxu0 %v2097_v7  ;;  %1230 = vmatprep.subr.bf16.mxu1 %v2099_v8  ;;  %v2065_v23 = vcombine.high %v481_v17, %v489_v18  ;;  %v2067_v24 = vcombine.high %v482_v19, %v490_v20  ;;  %v465_v25 = vld [vmem:[%s2698_s5 + $0x80] sm:$0xff]  ;;  %v466_v27 = vld [vmem:[%s2698_s5 + $0x88] sm:$0xff]  ;;  %v2064_v29 = vcombine.low %v481_v17, %v489_v18  ;;  %v516_v63 = vld [vmem:[%s2698_s5 + $0x218] sm:$0xff] }
  0x6a   : > { %v473_v26 = vld [vmem:[%s2698_s5 + $0xc0] sm:$0xff]  ;;  %v474_v28 = vld [vmem:[%s2698_s5 + $0xc8] sm:$0xff]  ;;  %v2066_v30 = vcombine.low %v482_v19, %v490_v20  ;;  %v524_v0 = vld [vmem:[%s2698_s5 + $0x258] sm:$0xff]  ;;  %v2101_v3 = vcombine.high %v515_v61, %v523_v62  ;;  %v2100_v10 = vcombine.low %v515_v61, %v523_v62 }
  0x6b   : > { %v2049_v31 = vcombine.high %v465_v25, %v473_v26  ;;  %v2051_v32 = vcombine.high %v466_v27, %v474_v28  ;;  %v449_v33 = vld [vmem:[%s2698_s5] sm:$0xff]  ;;  %v450_v35 = vld [vmem:[%s2698_s5 + $0x8] sm:$0xff]  ;;  %v2048_v37 = vcombine.low %v465_v25, %v473_v26  ;;  %v2050_v38 = vcombine.low %v466_v27, %v474_v28  ;;  %v499_v5 = vld [vmem:[%s2698_s5 + $0x190] sm:$0xff] }
  0x6c   : > { %1178 = vmatpush1.bf16.msra.mxu0 %v2096_v13  ;;  %1231 = vmatpush1.bf16.msra.mxu1 %v2098_v14  ;;  %v457_v34 = vld [vmem:[%s2698_s5 + $0x40] sm:$0xff]  ;;  %v458_v36 = vld [vmem:[%s2698_s5 + $0x48] sm:$0xff]  ;;  %v2103_v4 = vcombine.high %v516_v63, %v524_v0  ;;  %v507_v6 = vld [vmem:[%s2698_s5 + $0x1d0] sm:$0xff]  ;;  %v2102_v11 = vcombine.low %v516_v63, %v524_v0 }
  0x6d   : > { %1179 = vmatprep.subr.bf16.mxu0 %v2081_v15  ;;  %1232 = vmatprep.subr.bf16.mxu1 %v2083_v16  ;;  %v2033_v39 = vcombine.high %v449_v33, %v457_v34  ;;  %v2035_v40 = vcombine.high %v450_v35, %v458_v36  ;;  %v2032_v45 = vcombine.low %v449_v33, %v457_v34  ;;  %v2746_v54 = vld [vmem:[%s3245_s1] sm:$0xff]   ;;  %v500_v7 = vld [vmem:[%s2698_s5 + $0x198] sm:$0xff]  ;;  %v2770_v9 = vld [vmem:[%s3245_s1 + $0x8] sm:$0xff]  }
  0x6e   : > { %v2034_v46 = vcombine.low %v450_v35, %v458_v36  ;;  %v508_v8 = vld [vmem:[%s2698_s5 + $0x1d8] sm:$0xff]  ;;  %v2085_v12 = vcombine.high %v499_v5, %v507_v6  ;;  %v483_v14 = vld [vmem:[%s2698_s5 + $0x110] sm:$0xff]  ;;  %v2084_v18 = vcombine.low %v499_v5, %v507_v6  ;;  %v558_v41 = vld [vmem:[%s2698_s5 + $0x368] sm:$0x33] }
  0x6f   : > { %v2087_v13 = vcombine.high %v500_v7, %v508_v8  ;;  %v491_v15 = vld [vmem:[%s2698_s5 + $0x150] sm:$0xff]  ;;  %v484_v16 = vld [vmem:[%s2698_s5 + $0x118] sm:$0xff]  ;;  %v2086_v19 = vcombine.low %v500_v7, %v508_v8  ;;  %v533_v49 = vld [vmem:[%s2698_s5 + $0x2a0] sm:$0xff] }
  0x70   : > { %1180 = vmatpush1.bf16.msra.mxu0 %v2080_v21  ;;  %1233 = vmatpush1.bf16.msra.mxu1 %v2082_v22  ;;  %v492_v17 = vld [vmem:[%s2698_s5 + $0x158] sm:$0xff]  ;;  %v2069_v20 = vcombine.high %v483_v14, %v491_v15  ;;  %v467_v22 = vld [vmem:[%s2698_s5 + $0x90] sm:$0xff]  ;;  %v2068_v26 = vcombine.low %v483_v14, %v491_v15  ;;  %v534_v51 = vld [vmem:[%s2698_s5 + $0x2a8] sm:$0xff] }
  0x71   : > { %1181 = vmatprep.subr.bf16.mxu0 %v2065_v23  ;;  %1234 = vmatprep.subr.bf16.mxu1 %v2067_v24  ;;  %v2071_v21 = vcombine.high %v484_v16, %v492_v17  ;;  %v475_v23 = vld [vmem:[%s2698_s5 + $0xd0] sm:$0xff]  ;;  %v468_v24 = vld [vmem:[%s2698_s5 + $0x98] sm:$0xff]  ;;  %v2070_v27 = vcombine.low %v484_v16, %v492_v17  ;;  %v542_v52 = vld [vmem:[%s2698_s5 + $0x2e8] sm:$0xff] }
  0x72   : > { %v476_v25 = vld [vmem:[%s2698_s5 + $0xd8] sm:$0xff]  ;;  %v2053_v28 = vcombine.high %v467_v22, %v475_v23  ;;  %v2052_v34 = vcombine.low %v467_v22, %v475_v23  ;;  %v526_v61 = vld [vmem:[%s2698_s5 + $0x268] sm:$0xff]  ;;  %v2122_v63 = vcombine.low %v534_v51, %v542_v52 }
  0x73   : > { %v460_v33 = vld [vmem:[%s2698_s5 + $0x58] sm:$0xff]  ;;  %v2054_v35 = vcombine.low %v468_v24, %v476_v25  ;;  %v510_v5 = vld [vmem:[%s2698_s5 + $0x1e8] sm:$0xff] }
  0x74   : > { %1182 = vmatpush1.bf16.msra.mxu0 %v2064_v29  ;;  %1235 = vmatpush1.bf16.msra.mxu1 %v2066_v30  ;;  %v2055_v29 = vcombine.high %v468_v24, %v476_v25  ;;  %v451_v30 = vld [vmem:[%s2698_s5 + $0x10] sm:$0xff]  ;;  %v494_v14 = vld [vmem:[%s2698_s5 + $0x168] sm:$0xff] }
  0x75   : > { %1183 = vmatprep.subr.bf16.mxu0 %v2049_v31  ;;  %1236 = vmatprep.subr.bf16.mxu1 %v2051_v32  ;;  %v459_v31 = vld [vmem:[%s2698_s5 + $0x50] sm:$0xff]  ;;  %v452_v32 = vld [vmem:[%s2698_s5 + $0x18] sm:$0xff]  ;;  %v478_v22 = vld [vmem:[%s2698_s5 + $0xe8] sm:$0xff] }
  0x76   : > { %v2037_v36 = vcombine.high %v451_v30, %v459_v31  ;;  %v2036_v42 = vcombine.low %v451_v30, %v459_v31  ;;  %v2038_v43 = vcombine.low %v452_v32, %v460_v33  ;;  %v462_v30 = vld [vmem:[%s2698_s5 + $0x68] sm:$0xff] }
  0x78   : > { %1184 = vmatpush1.bf16.msra.mxu0 %v2048_v37  ;;  %1237 = vmatpush1.bf16.msra.mxu1 %v2050_v38  ;;  %v2039_v37 = vcombine.high %v452_v32, %v460_v33  ;;  %v549_v38 = vld [vmem:[%s2698_s5 + $0x320] sm:$0xff] }
  0x79   : > { %1185 = vmatprep.subr.bf16.mxu0 %v2033_v39  ;;  %1238 = vmatprep.subr.bf16.mxu1 %v2035_v40  ;;  %v557_v39 = vld [vmem:[%s2698_s5 + $0x360] sm:$0x33]  ;;  %v550_v40 = vld [vmem:[%s2698_s5 + $0x328] sm:$0xff] }
  0x7a   : > { %v2137_v44 = vcombine.high %v549_v38, %v557_v39 }
  0x7c   : > { %1186 = vmatpush1.bf16.msra.mxu0 %v2032_v45  ;;  %1239 = vmatpush1.bf16.msra.mxu1 %v2034_v46  ;;  %v2136_v45 = vcombine.low %v549_v38, %v557_v39  ;;  %v2139_v46 = vcombine.high %v550_v40, %v558_v41  ;;  %v560_v38 = vld [vmem:[%s2698_s5 + $0x378] sm:$0x33] }
  0x7d   : > { %2150 = vmatprep.subr.msk.bf16.mxu0 %vm1122_vm0, %v2133_v47  ;;  %2153 = vmatprep.subr.msk.bf16.mxu1 %vm1122_vm0, %v2135_v50  ;;  %v2138_v47 = vcombine.low %v550_v40, %v558_v41  ;;  %v541_v50 = vld [vmem:[%s2698_s5 + $0x2e0] sm:$0xff] }
  0x7e   : > { %v1148_v53 = vsel %vm1122_vm0, %v2136_v45, 0  ;;  %v2121_v55 = vcombine.high %v533_v49, %v541_v50  ;;  %v2120_v62 = vcombine.low %v533_v49, %v541_v50  ;;  %v535_v45 = vld [vmem:[%s2698_s5 + $0x2b0] sm:$0xff]  ;;  %v544_v49 = vld [vmem:[%s2698_s5 + $0x2f8] sm:$0xff] }
  0x7f   : > { %2145 = vmatmul.mubr.msk.bf16.vlgmr.msra.gmra.mxu0 %vm1115_vm1, %v2746_v54  ;;  %2148 = vmatmul.mubr.msk.bf16.vlgmr.msra.gmra.mxu1 %vm1115_vm1, %v2746_v54  ;;  %v1154_v56 = vsel %vm1122_vm0, %v2138_v47, 0  ;;  %v536_v47 = vld [vmem:[%s2698_s5 + $0x2b8] sm:$0xff] }
  0x80   : > { %1280 = vmatpush1.bf16.msra.mxu0 %v1136_v57  ;;  %1333 = vmatpush1.bf16.msra.mxu1 %v1142_v59  ;;  %v2123_v57 = vcombine.high %v534_v51, %v542_v52  ;;  %v525_v59 = vld [vmem:[%s2698_s5 + $0x260] sm:$0xff] }
  0x81   : > { %1281 = vmatprep.subr.bf16.mxu0 %v2117_v58  ;;  %1334 = vmatprep.subr.bf16.mxu1 %v2119_v60  ;;  %v517_v58 = vld [vmem:[%s2698_s5 + $0x220] sm:$0xff]  ;;  %v518_v60 = vld [vmem:[%s2698_s5 + $0x228] sm:$0xff] }
  0x82   : > { %1213 = vmatprep.mubr.bf16.mxu0 %v2351_v48  ;;  %1266 = vmatprep.mubr.bf16.mxu1 %v2351_v48  ;;  %v2105_v0 = vcombine.high %v517_v58, %v525_v59  ;;  %v2104_v6 = vcombine.low %v517_v58, %v525_v59  ;;  %v2106_v7 = vcombine.low %v518_v60, %v526_v61  ;;  %v528_v58 = vld [vmem:[%s2698_s5 + $0x278] sm:$0xff] }
  0x84   : > { %1282 = vmatpush1.bf16.msra.mxu0 %v2116_v1  ;;  %1335 = vmatpush1.bf16.msra.mxu1 %v2118_v2  ;;  %v2107_v1 = vcombine.high %v518_v60, %v526_v61  ;;  %v501_v2 = vld [vmem:[%s2698_s5 + $0x1a0] sm:$0xff]  ;;  %v2126_v60 = vcombine.low %v536_v47, %v544_v49 }
  0x85   : > { %1283 = vmatprep.subr.bf16.mxu0 %v2101_v3  ;;  %1336 = vmatprep.subr.bf16.mxu1 %v2103_v4  ;;  %v509_v3 = vld [vmem:[%s2698_s5 + $0x1e0] sm:$0xff]  ;;  %v502_v4 = vld [vmem:[%s2698_s5 + $0x1a8] sm:$0xff] }
  0x86   : > { %v2089_v8 = vcombine.high %v501_v2, %v509_v3  ;;  %v2088_v15 = vcombine.low %v501_v2, %v509_v3  ;;  %v2090_v16 = vcombine.low %v502_v4, %v510_v5  ;;  %v512_v2 = vld [vmem:[%s2698_s5 + $0x1f8] sm:$0xff] }
  0x87   : > { %2146 = vmatmul.mubr.msk.bf16.gmra.mxu0 %vm1115_vm1, %v2770_v9  ;;  %2149 = vmatmul.mubr.msk.bf16.gmra.mxu1 %vm1115_vm1, %v2770_v9 }
  0x88   : > { %1284 = vmatpush1.bf16.msra.mxu0 %v2100_v10  ;;  %1337 = vmatpush1.bf16.msra.mxu1 %v2102_v11  ;;  %v2091_v10 = vcombine.high %v502_v4, %v510_v5  ;;  %v485_v11 = vld [vmem:[%s2698_s5 + $0x120] sm:$0xff] }
  0x89   : > { %1285 = vmatprep.subr.bf16.mxu0 %v2085_v12  ;;  %1338 = vmatprep.subr.bf16.mxu1 %v2087_v13  ;;  %v493_v12 = vld [vmem:[%s2698_s5 + $0x160] sm:$0xff]  ;;  %v486_v13 = vld [vmem:[%s2698_s5 + $0x128] sm:$0xff] }
  0x8a   : > { %1309 = vmatprep.mubr.bf16.mxu0 %v2351_v48  ;;  %1362 = vmatprep.mubr.bf16.mxu1 %v2351_v48  ;;  %v2073_v17 = vcombine.high %v485_v11, %v493_v12  ;;  %v2072_v23 = vcombine.low %v485_v11, %v493_v12  ;;  %v2074_v24 = vcombine.low %v486_v13, %v494_v14  ;;  %v496_v11 = vld [vmem:[%s2698_s5 + $0x178] sm:$0xff] }
  0x8c   : > { %1286 = vmatpush1.bf16.msra.mxu0 %v2084_v18  ;;  %1339 = vmatpush1.bf16.msra.mxu1 %v2086_v19  ;;  %v2075_v18 = vcombine.high %v486_v13, %v494_v14  ;;  %v469_v19 = vld [vmem:[%s2698_s5 + $0xa0] sm:$0xff] }
  0x8d   : > { %1287 = vmatprep.subr.bf16.mxu0 %v2069_v20  ;;  %1340 = vmatprep.subr.bf16.mxu1 %v2071_v21  ;;  %v477_v20 = vld [vmem:[%s2698_s5 + $0xe0] sm:$0xff]  ;;  %v470_v21 = vld [vmem:[%s2698_s5 + $0xa8] sm:$0xff] }
  0x8e   : > { %v2057_v25 = vcombine.high %v469_v19, %v477_v20  ;;  %v2056_v31 = vcombine.low %v469_v19, %v477_v20  ;;  %v2058_v32 = vcombine.low %v470_v21, %v478_v22  ;;  %v480_v19 = vld [vmem:[%s2698_s5 + $0xf8] sm:$0xff] }
  0x90   : > { %1288 = vmatpush1.bf16.msra.mxu0 %v2068_v26  ;;  %1341 = vmatpush1.bf16.msra.mxu1 %v2070_v27  ;;  %v2059_v26 = vcombine.high %v470_v21, %v478_v22  ;;  %v453_v27 = vld [vmem:[%s2698_s5 + $0x20] sm:$0xff] }
  0x91   : > { %1289 = vmatprep.subr.bf16.mxu0 %v2053_v28  ;;  %1342 = vmatprep.subr.bf16.mxu1 %v2055_v29  ;;  %v461_v28 = vld [vmem:[%s2698_s5 + $0x60] sm:$0xff]  ;;  %v454_v29 = vld [vmem:[%s2698_s5 + $0x28] sm:$0xff] }
  0x92   : > { %v2041_v33 = vcombine.high %v453_v27, %v461_v28  ;;  %v2040_v39 = vcombine.low %v453_v27, %v461_v28  ;;  %v2042_v40 = vcombine.low %v454_v29, %v462_v30  ;;  %v464_v27 = vld [vmem:[%s2698_s5 + $0x78] sm:$0xff] }
  0x94   : > { %1290 = vmatpush1.bf16.msra.mxu0 %v2052_v34  ;;  %1343 = vmatpush1.bf16.msra.mxu1 %v2054_v35  ;;  %v2043_v34 = vcombine.high %v454_v29, %v462_v30  ;;  %v551_v35 = vld [vmem:[%s2698_s5 + $0x330] sm:$0xff] }
  0x95   : > { %1291 = vmatprep.subr.bf16.mxu0 %v2037_v36  ;;  %1344 = vmatprep.subr.bf16.mxu1 %v2039_v37  ;;  %v559_v36 = vld [vmem:[%s2698_s5 + $0x370] sm:$0x33]  ;;  %v552_v37 = vld [vmem:[%s2698_s5 + $0x338] sm:$0xff] }
  0x96   : > { %v2141_v41 = vcombine.high %v551_v35, %v559_v36 }
  0x98   : > { %1292 = vmatpush1.bf16.msra.mxu0 %v2036_v42  ;;  %1345 = vmatpush1.bf16.msra.mxu1 %v2038_v43  ;;  %v2140_v42 = vcombine.low %v551_v35, %v559_v36  ;;  %v2143_v43 = vcombine.high %v552_v37, %v560_v38 }
  0x99   : > { %2156 = vmatprep.subr.msk.bf16.mxu0 %vm1122_vm0, %v2137_v44  ;;  %2159 = vmatprep.subr.msk.bf16.mxu1 %vm1122_vm0, %v2139_v46  ;;  %v2142_v44 = vcombine.low %v552_v37, %v560_v38  ;;  %v543_v46 = vld [vmem:[%s2698_s5 + $0x2f0] sm:$0xff] }
  0x9a   : > { %v1160_v50 = vsel %vm1122_vm0, %v2140_v42, 0  ;;  %v2125_v51 = vcombine.high %v535_v45, %v543_v46  ;;  %v2124_v59 = vcombine.low %v535_v45, %v543_v46 }
  0x9b   : > { %2151 = vmatmul.mubr.msk.bf16.vlgmr.msra.gmra.mxu0 %vm1115_vm1, %v2746_v54  ;;  %2154 = vmatmul.mubr.msk.bf16.vlgmr.msra.gmra.mxu1 %vm1115_vm1, %v2746_v54  ;;  %v1166_v52 = vsel %vm1122_vm0, %v2142_v44, 0 }
  0x9c   : > { %1386 = vmatpush1.bf16.msra.mxu0 %v1148_v53  ;;  %1439 = vmatpush1.bf16.msra.mxu1 %v1154_v56  ;;  %v2127_v53 = vcombine.high %v536_v47, %v544_v49  ;;  %v527_v56 = vld [vmem:[%s2698_s5 + $0x270] sm:$0xff] }
  0x9d   : > { %1387 = vmatprep.subr.bf16.mxu0 %v2121_v55  ;;  %1440 = vmatprep.subr.bf16.mxu1 %v2123_v57  ;;  %v519_v55 = vld [vmem:[%s2698_s5 + $0x230] sm:$0xff]  ;;  %v520_v57 = vld [vmem:[%s2698_s5 + $0x238] sm:$0xff] }
  0x9e   : > { %1319 = vmatprep.mubr.bf16.mxu0 %v2351_v48  ;;  %1372 = vmatprep.mubr.bf16.mxu1 %v2351_v48  ;;  %v2109_v61 = vcombine.high %v519_v55, %v527_v56  ;;  %v2108_v3 = vcombine.low %v519_v55, %v527_v56  ;;  %v2110_v4 = vcombine.low %v520_v57, %v528_v58 }
  0xa0   : > { %1388 = vmatpush1.bf16.msra.mxu0 %v2120_v62  ;;  %1441 = vmatpush1.bf16.msra.mxu1 %v2122_v63  ;;  %v2111_v62 = vcombine.high %v520_v57, %v528_v58  ;;  %v503_v63 = vld [vmem:[%s2698_s5 + $0x1b0] sm:$0xff] }
  0xa1   : > { %1389 = vmatprep.subr.bf16.mxu0 %v2105_v0  ;;  %1442 = vmatprep.subr.bf16.mxu1 %v2107_v1  ;;  %v511_v0 = vld [vmem:[%s2698_s5 + $0x1f0] sm:$0xff]  ;;  %v504_v1 = vld [vmem:[%s2698_s5 + $0x1b8] sm:$0xff] }
  0xa2   : > { %v2093_v5 = vcombine.high %v503_v63, %v511_v0  ;;  %v2092_v12 = vcombine.low %v503_v63, %v511_v0  ;;  %v2094_v13 = vcombine.low %v504_v1, %v512_v2 }
  0xa3   : > { %2152 = vmatmul.mubr.msk.bf16.gmra.mxu0 %vm1115_vm1, %v2770_v9  ;;  %2155 = vmatmul.mubr.msk.bf16.gmra.mxu1 %vm1115_vm1, %v2770_v9 }
  0xa4   : > { %1390 = vmatpush1.bf16.msra.mxu0 %v2104_v6  ;;  %1443 = vmatpush1.bf16.msra.mxu1 %v2106_v7  ;;  %v2095_v6 = vcombine.high %v504_v1, %v512_v2  ;;  %v487_v7 = vld [vmem:[%s2698_s5 + $0x130] sm:$0xff] }
  0xa5   : > { %1391 = vmatprep.subr.bf16.mxu0 %v2089_v8  ;;  %1444 = vmatprep.subr.bf16.mxu1 %v2091_v10  ;;  %v495_v8 = vld [vmem:[%s2698_s5 + $0x170] sm:$0xff]  ;;  %v488_v10 = vld [vmem:[%s2698_s5 + $0x138] sm:$0xff] }
  0xa6   : > { %1415 = vmatprep.mubr.bf16.mxu0 %v2351_v48  ;;  %1468 = vmatprep.mubr.bf16.mxu1 %v2351_v48  ;;  %v2077_v14 = vcombine.high %v487_v7, %v495_v8  ;;  %v2076_v20 = vcombine.low %v487_v7, %v495_v8  ;;  %v2078_v21 = vcombine.low %v488_v10, %v496_v11 }
  0xa8   : > { %1392 = vmatpush1.bf16.msra.mxu0 %v2088_v15  ;;  %1445 = vmatpush1.bf16.msra.mxu1 %v2090_v16  ;;  %v2079_v15 = vcombine.high %v488_v10, %v496_v11  ;;  %v471_v16 = vld [vmem:[%s2698_s5 + $0xb0] sm:$0xff] }
  0xa9   : > { %1393 = vmatprep.subr.bf16.mxu0 %v2073_v17  ;;  %1446 = vmatprep.subr.bf16.mxu1 %v2075_v18  ;;  %v479_v17 = vld [vmem:[%s2698_s5 + $0xf0] sm:$0xff]  ;;  %v472_v18 = vld [vmem:[%s2698_s5 + $0xb8] sm:$0xff] }
  0xaa   : > { %v2061_v22 = vcombine.high %v471_v16, %v479_v17  ;;  %v2060_v28 = vcombine.low %v471_v16, %v479_v17  ;;  %v2062_v29 = vcombine.low %v472_v18, %v480_v19 }
  0xac   : > { %1394 = vmatpush1.bf16.msra.mxu0 %v2072_v23  ;;  %1447 = vmatpush1.bf16.msra.mxu1 %v2074_v24  ;;  %v2063_v23 = vcombine.high %v472_v18, %v480_v19  ;;  %v455_v24 = vld [vmem:[%s2698_s5 + $0x30] sm:$0xff] }
  0xad   : > { %1395 = vmatprep.subr.bf16.mxu0 %v2057_v25  ;;  %1448 = vmatprep.subr.bf16.mxu1 %v2059_v26  ;;  %v463_v25 = vld [vmem:[%s2698_s5 + $0x70] sm:$0xff]  ;;  %v456_v26 = vld [vmem:[%s2698_s5 + $0x38] sm:$0xff] }
  0xae   : > { %v2045_v30 = vcombine.high %v455_v24, %v463_v25 }
  0xb0   : > { %1396 = vmatpush1.bf16.msra.mxu0 %v2056_v31  ;;  %1449 = vmatpush1.bf16.msra.mxu1 %v2058_v32  ;;  %v2047_v31 = vcombine.high %v456_v26, %v464_v27  ;;  %v2044_v32 = vcombine.low %v455_v24, %v463_v25 }
  0xb1   : > { %1397 = vmatprep.subr.bf16.mxu0 %v2041_v33  ;;  %1450 = vmatprep.subr.bf16.mxu1 %v2043_v34  ;;  %v2046_v33 = vcombine.low %v456_v26, %v464_v27 }
  0xb4   : > { %1398 = vmatpush1.bf16.msra.mxu0 %v2040_v39  ;;  %1451 = vmatpush1.bf16.msra.mxu1 %v2042_v40 }
  0xb5   : > { %2162 = vmatprep.subr.msk.bf16.mxu0 %vm1122_vm0, %v2141_v41  ;;  %2165 = vmatprep.subr.msk.bf16.mxu1 %vm1122_vm0, %v2143_v43 }
  0xb7   : > { %2157 = vmatmul.mubr.msk.bf16.vlgmr.msra.gmra.mxu0 %vm1115_vm1, %v2746_v54  ;;  %2160 = vmatmul.mubr.msk.bf16.vlgmr.msra.gmra.mxu1 %vm1115_vm1, %v2746_v54 }
  0xb8   : > { %1492 = vmatpush1.bf16.msra.mxu0 %v1160_v50  ;;  %1545 = vmatpush1.bf16.msra.mxu1 %v1166_v52 }
  0xb9   : > { %1493 = vmatprep.subr.bf16.mxu0 %v2125_v51  ;;  %1546 = vmatprep.subr.bf16.mxu1 %v2127_v53 }
  0xba   : > { %1425 = vmatprep.mubr.bf16.mxu0 %v2351_v48  ;;  %1478 = vmatprep.mubr.bf16.mxu1 %v2351_v48 }
  0xbc   : > { %1494 = vmatpush1.bf16.msra.mxu0 %v2124_v59  ;;  %1547 = vmatpush1.bf16.msra.mxu1 %v2126_v60 }
  0xbd   : > { %1495 = vmatprep.subr.bf16.mxu0 %v2109_v61  ;;  %1548 = vmatprep.subr.bf16.mxu1 %v2111_v62 }
  0xbf   : > { %2158 = vmatmul.mubr.msk.bf16.gmra.mxu0 %vm1115_vm1, %v2770_v9  ;;  %2161 = vmatmul.mubr.msk.bf16.gmra.mxu1 %vm1115_vm1, %v2770_v9 }
  0xc0   : > { %1496 = vmatpush1.bf16.msra.mxu0 %v2108_v3  ;;  %1549 = vmatpush1.bf16.msra.mxu1 %v2110_v4 }
  0xc1   : > { %1497 = vmatprep.subr.bf16.mxu0 %v2093_v5  ;;  %1550 = vmatprep.subr.bf16.mxu1 %v2095_v6 }
  0xc2   : > { %1521 = vmatprep.mubr.bf16.mxu0 %v2351_v48  ;;  %1574 = vmatprep.mubr.bf16.mxu1 %v2351_v48 }
  0xc4   : > { %1498 = vmatpush1.bf16.msra.mxu0 %v2092_v12  ;;  %1551 = vmatpush1.bf16.msra.mxu1 %v2094_v13 }
  0xc5   : > { %1499 = vmatprep.subr.bf16.mxu0 %v2077_v14  ;;  %1552 = vmatprep.subr.bf16.mxu1 %v2079_v15 }
  0xc8   : > { %1500 = vmatpush1.bf16.msra.mxu0 %v2076_v20  ;;  %1553 = vmatpush1.bf16.msra.mxu1 %v2078_v21 }
  0xc9   : > { %1501 = vmatprep.subr.bf16.mxu0 %v2061_v22  ;;  %1554 = vmatprep.subr.bf16.mxu1 %v2063_v23 }
  0xcc   : > { %1502 = vmatpush1.bf16.msra.mxu0 %v2060_v28  ;;  %1555 = vmatpush1.bf16.msra.mxu1 %v2062_v29 }
  0xcd   : > { %1503 = vmatprep.subr.bf16.mxu0 %v2045_v30  ;;  %1556 = vmatprep.subr.bf16.mxu1 %v2047_v31 }
  0xd0   : > { %1504 = vmatpush1.bf16.msra.mxu0 %v2044_v32  ;;  %1557 = vmatpush1.bf16.msra.mxu1 %v2046_v33 }
  0xd3   : > { %2163 = vmatmul.mubr.msk.bf16.vlgmr.msra.gmra.mxu0 %vm1115_vm1, %v2746_v54  ;;  %2166 = vmatmul.mubr.msk.bf16.vlgmr.msra.gmra.mxu1 %vm1115_vm1, %v2746_v54 }
  0xd4   : > { %1531 = vmatprep.mubr.bf16.mxu0 %v2351_v48  ;;  %1584 = vmatprep.mubr.bf16.mxu1 %v2351_v48 }
  0xdb   : > { %2164 = vmatmul.mubr.msk.bf16.gmra.mxu0 %vm1115_vm1, %v2770_v9  ;;  %2167 = vmatmul.mubr.msk.bf16.gmra.mxu1 %vm1115_vm1, %v2770_v9 }
 0x13f   : > { %v2890_v34 = vpop.f32.mrf.mxu0  ;;  %v2898_v54 = vpop.f32.mrf.mxu1 }
 0x140   : > { %1595 = vst [vmem:[%s2892_s24] sm:$0xff] %v2890_v34  ;;  %v1727_v48 = vmul.f32 %v2890_v34, %v2890_v34  ;;  %1597 = vst [vmem:[%s2892_s24 + $0x10] sm:$0xff] %v2898_v54  ;;  %v1729_v35 = vmul.f32 %v2898_v54, %v2898_v54 }
 0x141   : > { %v2902_v9 = vpop.f32.mrf.mxu0  ;;  %v2910_v37 = vpop.f32.mrf.mxu1 }
 0x142   : > { %1596 = vst [vmem:[%s2892_s24 + $0x8] sm:$0xff] %v2902_v9  ;;  %v1728_v36 = vmul.f32 %v2902_v9, %v2902_v9  ;;  %1598 = vst [vmem:[%s2892_s24 + $0x18] sm:$0xff] %v2910_v37  ;;  %v1730_v40 = vmul.f32 %v2910_v37, %v2910_v37  ;;  %v1659_v32 = vadd.f32 %v2902_v9, %v2890_v34 }
 0x143   : > { %v2914_v38 = vpop.f32.mrf.mxu0  ;;  %v2920_v41 = vpop.f32.mrf.mxu1 }
 0x144   : > { %v1791_v39 = vadd.f32 %v1728_v36, %v1727_v48  ;;  %1611 = vst [vmem:[%s2892_s24 + $0x80] sm:$0xff] %v2914_v38  ;;  %1613 = vst [vmem:[%s2892_s24 + $0x90] sm:$0xff] %v2920_v41  ;;  %v1743_v48 = vmul.f32 %v2914_v38, %v2914_v38 }
 0x145   : > { %v2924_v42 = vpop.f32.mrf.mxu0  ;;  %v2930_v45 = vpop.f32.mrf.mxu1 }
 0x146   : > { %v1792_v43 = vadd.f32 %v1791_v39, %v1729_v35  ;;  %1612 = vst [vmem:[%s2892_s24 + $0x88] sm:$0xff] %v2924_v42  ;;  %v1676_v44 = vadd.f32 %v2924_v42, %v2914_v38  ;;  %1614 = vst [vmem:[%s2892_s24 + $0x98] sm:$0xff] %v2930_v45  ;;  %v1744_v33 = vmul.f32 %v2924_v42, %v2924_v42 }
 0x147   : > { %v1215_v46 = vpop.f32.mrf.mxu0  ;;  %v1268_v51 = vpop.f32.mrf.mxu1  ;;  %v1660_v35 = vadd.f32 %v1659_v32, %v2898_v54  ;;  %v1745_v39 = vmul.f32 %v2920_v41, %v2920_v41  ;;  %v1746_v34 = vmul.f32 %v2930_v45, %v2930_v45 }
 0x148   : > { %v2934_v47 = vadd.f32 %v1792_v43, %v1730_v40  ;;  %v1677_v49 = vadd.f32 %v1676_v44, %v2920_v41  ;;  %1627 = vst [vmem:[%s2892_s24 + $0x100] sm:$0xff] %v1215_v46  ;;  %v1759_v50 = vmul.f32 %v1215_v46, %v1215_v46  ;;  %1629 = vst [vmem:[%s2892_s24 + $0x110] sm:$0xff] %v1268_v51 }
 0x149   : > { %v1217_v52 = vpop.f32.mrf.mxu0  ;;  %v1761_v57 = vmul.f32 %v1268_v51, %v1268_v51  ;;  %v1270_v58 = vpop.f32.mrf.mxu1  ;;  %v1808_v36 = vadd.f32 %v1744_v33, %v1743_v48  ;;  %v1661_v40 = vadd.f32 %v1660_v35, %v2910_v37 }
 0x14a   : > { %v2940_v53 = vadd.f32 %v1677_v49, %v2930_v45  ;;  %1628 = vst [vmem:[%s2892_s24 + $0x108] sm:$0xff] %v1217_v52  ;;  %v1693_v55 = vadd.f32 %v1217_v52, %v1215_v46  ;;  %v1760_v56 = vmul.f32 %v1217_v52, %v1217_v52  ;;  %1630 = vst [vmem:[%s2892_s24 + $0x118] sm:$0xff] %v1270_v58 }
 0x14b   : > { %v1219_v59 = vpop.f32.mrf.mxu0  ;;  %v1762_v63 = vmul.f32 %v1270_v58, %v1270_v58  ;;  %v1272_v0 = vpop.f32.mrf.mxu1  ;;  %v1809_v43 = vadd.f32 %v1808_v36, %v1745_v39 }
 0x14c   : > { %v1825_v60 = vadd.f32 %v1760_v56, %v1759_v50  ;;  %1643 = vst [vmem:[%s2892_s24 + $0x180] sm:$0xff] %v1219_v59  ;;  %v1775_v61 = vmul.f32 %v1219_v59, %v1219_v59  ;;  %v1694_v62 = vadd.f32 %v1693_v55, %v1268_v51  ;;  %1645 = vst [vmem:[%s2892_s24 + $0x190] sm:$0xff] %v1272_v0 }
 0x14d   : > { %v1221_v1 = vpop.f32.mrf.mxu0  ;;  %v1777_v2 = vmul.f32 %v1272_v0, %v1272_v0  ;;  %v1274_v7 = vpop.f32.mrf.mxu1  ;;  %v1810_v37 = vadd.f32 %v1809_v43, %v1746_v34 }
 0x14e   : > { %v1826_v3 = vadd.f32 %v1825_v60, %v1761_v57  ;;  %1644 = vst [vmem:[%s2892_s24 + $0x188] sm:$0xff] %v1221_v1  ;;  %v1710_v4 = vadd.f32 %v1221_v1, %v1219_v59  ;;  %v1776_v5 = vmul.f32 %v1221_v1, %v1221_v1  ;;  %v2947_v6 = vadd.f32 %v1694_v62, %v1270_v58 }
 0x14f   : > { %1646 = vst [vmem:[%s2892_s24 + $0x198] sm:$0xff] %v1274_v7  ;;  %v1778_v12 = vmul.f32 %v1274_v7, %v1274_v7 }
 0x150   : > { %v1842_v8 = vadd.f32 %v1776_v5, %v1775_v61  ;;  %v2950_v10 = vadd.f32 %v1826_v3, %v1762_v63  ;;  %v1711_v11 = vadd.f32 %v1710_v4, %v1272_v0 }
 0x152   : > { %v1843_v13 = vadd.f32 %v1842_v8, %v1777_v2  ;;  %v2952_v14 = vadd.f32 %v1711_v11, %v1274_v7 }
 0x154   : > { %v2954_v15 = vadd.f32 %v1843_v13, %v1778_v12 }
 0x15b   : > { %v1311_v16 = vpop.f32.mrf.mxu0  ;;  %v2957_v17 = vpop.f32.mrf.mxu1 }
 0x15c   : > { %1599 = vst [vmem:[%s2892_s24 + $0x20] sm:$0xff] %v1311_v16  ;;  %1601 = vst [vmem:[%s2892_s24 + $0x30] sm:$0xff] %v2957_v17  ;;  %v1731_v44 = vmul.f32 %v1311_v16, %v1311_v16  ;;  %v1662_v9 = vadd.f32 %v1661_v40, %v1311_v16 }
 0x15d   : > { %v1313_v18 = vpop.f32.mrf.mxu0  ;;  %v2962_v19 = vpop.f32.mrf.mxu1 }
 0x15e   : > { %1600 = vst [vmem:[%s2892_s24 + $0x28] sm:$0xff] %v1313_v18  ;;  %1602 = vst [vmem:[%s2892_s24 + $0x38] sm:$0xff] %v2962_v19  ;;  %v1794_v41 = vadd.f32 %v2934_v47, %v1731_v44  ;;  %v1732_v49 = vmul.f32 %v1313_v18, %v1313_v18  ;;  %v1663_v52 = vadd.f32 %v1662_v9, %v1313_v18 }
 0x15f   : > { %v1315_v20 = vpop.f32.mrf.mxu0  ;;  %v2967_v21 = vpop.f32.mrf.mxu1  ;;  %v1734_v7 = vmul.f32 %v2962_v19, %v2962_v19 }
 0x160   : > { %1615 = vst [vmem:[%s2892_s24 + $0xa0] sm:$0xff] %v1315_v20  ;;  %1617 = vst [vmem:[%s2892_s24 + $0xb0] sm:$0xff] %v2967_v21  ;;  %v1747_v42 = vmul.f32 %v1315_v20, %v1315_v20  ;;  %v1679_v50 = vadd.f32 %v2940_v53, %v1315_v20  ;;  %v1733_v53 = vmul.f32 %v2957_v17, %v2957_v17 }
 0x161   : > { %v1317_v22 = vpop.f32.mrf.mxu0  ;;  %v2972_v23 = vpop.f32.mrf.mxu1  ;;  %v1795_v59 = vadd.f32 %v1794_v41, %v1732_v49  ;;  %v1664_v0 = vadd.f32 %v1663_v52, %v2957_v17  ;;  %v1749_v11 = vmul.f32 %v2967_v21, %v2967_v21 }
 0x162   : > { %1616 = vst [vmem:[%s2892_s24 + $0xa8] sm:$0xff] %v1317_v22  ;;  %1618 = vst [vmem:[%s2892_s24 + $0xb8] sm:$0xff] %v2972_v23  ;;  %v1811_v55 = vadd.f32 %v1810_v37, %v1747_v42  ;;  %v1748_v56 = vmul.f32 %v1317_v22, %v1317_v22  ;;  %v1680_v61 = vadd.f32 %v1679_v50, %v1317_v22 }
 0x163   : > { %v1321_v24 = vpop.f32.mrf.mxu0  ;;  %v2977_v25 = vpop.f32.mrf.mxu1  ;;  %v1796_v8 = vadd.f32 %v1795_v59, %v1733_v53  ;;  %v1665_v18 = vadd.f32 %v1664_v0, %v2962_v19  ;;  %v1750_v33 = vmul.f32 %v2972_v23, %v2972_v23 }
 0x164   : > { %1631 = vst [vmem:[%s2892_s24 + $0x120] sm:$0xff] %v1321_v24  ;;  %1633 = vst [vmem:[%s2892_s24 + $0x130] sm:$0xff] %v2977_v25  ;;  %v1763_v57 = vmul.f32 %v1321_v24, %v1321_v24  ;;  %v1696_v62 = vadd.f32 %v2947_v6, %v1321_v24  ;;  %v1812_v1 = vadd.f32 %v1811_v55, %v1748_v56 }
 0x165   : > { %v2979_v26 = vpop.f32.mrf.mxu0  ;;  %v2985_v27 = vpop.f32.mrf.mxu1  ;;  %v1681_v12 = vadd.f32 %v1680_v61, %v2967_v21  ;;  %v1797_v19 = vadd.f32 %v1796_v8, %v1734_v7 }
 0x166   : > { %1632 = vst [vmem:[%s2892_s24 + $0x128] sm:$0xff] %v2979_v26  ;;  %1634 = vst [vmem:[%s2892_s24 + $0x138] sm:$0xff] %v2985_v27  ;;  %v1828_v3 = vadd.f32 %v2950_v10, %v1763_v57  ;;  %v1764_v4 = vmul.f32 %v2979_v26, %v2979_v26  ;;  %v1697_v13 = vadd.f32 %v1696_v62, %v2979_v26 }
 0x167   : > { %v2987_v28 = vpop.f32.mrf.mxu0  ;;  %v2993_v29 = vpop.f32.mrf.mxu1  ;;  %v1813_v20 = vadd.f32 %v1812_v1, %v1749_v11  ;;  %v1682_v36 = vadd.f32 %v1681_v12, %v2972_v23  ;;  %v1766_v44 = vmul.f32 %v2985_v27, %v2985_v27 }
 0x168   : > { %1647 = vst [vmem:[%s2892_s24 + $0x1a0] sm:$0xff] %v2987_v28  ;;  %1649 = vst [vmem:[%s2892_s24 + $0x1b0] sm:$0xff] %v2993_v29  ;;  %v1779_v5 = vmul.f32 %v2987_v28, %v2987_v28  ;;  %v1713_v16 = vadd.f32 %v2952_v14, %v2987_v28  ;;  %v1829_v21 = vadd.f32 %v1828_v3, %v1764_v4 }
 0x169   : > { %v2995_v30 = vpop.f32.mrf.mxu0  ;;  %v3001_v31 = vpop.f32.mrf.mxu1  ;;  %v1765_v14 = vmul.f32 %v2977_v25, %v2977_v25  ;;  %v1698_v39 = vadd.f32 %v1697_v13, %v2977_v25  ;;  %v1814_v43 = vadd.f32 %v1813_v20, %v1750_v33  ;;  %v1781_v37 = vmul.f32 %v2993_v29, %v2993_v29 }
 0x16a   : > { %1648 = vst [vmem:[%s2892_s24 + $0x1a8] sm:$0xff] %v2995_v30  ;;  %1650 = vst [vmem:[%s2892_s24 + $0x1b8] sm:$0xff] %v3001_v31  ;;  %v1845_v26 = vadd.f32 %v2954_v15, %v1779_v5  ;;  %v1780_v28 = vmul.f32 %v2995_v30, %v2995_v30  ;;  %v1714_v40 = vadd.f32 %v1713_v16, %v2995_v30 }
 0x16b   : > { %v1830_v9 = vadd.f32 %v1829_v21, %v1765_v14  ;;  %v1699_v49 = vadd.f32 %v1698_v39, %v2985_v27  ;;  %v1782_v55 = vmul.f32 %v3001_v31, %v3001_v31 }
 0x16c   : > { %v1846_v42 = vadd.f32 %v1845_v26, %v1780_v28  ;;  %v1715_v50 = vadd.f32 %v1714_v40, %v2993_v29 }
 0x16d   : > { %v1831_v53 = vadd.f32 %v1830_v9, %v1766_v44 }
 0x16e   : > { %v1716_v27 = vadd.f32 %v1715_v50, %v3001_v31 }
 0x177   : > { %v3015_v46 = vpop.f32.mrf.mxu0  ;;  %v3021_v54 = vpop.f32.mrf.mxu1 }
 0x178   : > { %1603 = vst [vmem:[%s2892_s24 + $0x40] sm:$0xff] %v3015_v46  ;;  %1605 = vst [vmem:[%s2892_s24 + $0x50] sm:$0xff] %v3021_v54  ;;  %v1735_v22 = vmul.f32 %v3015_v46, %v3015_v46  ;;  %v1666_v48 = vadd.f32 %v1665_v18, %v3015_v46  ;;  %v1737_v56 = vmul.f32 %v3021_v54, %v3021_v54 }
 0x179   : > { %v3025_v38 = vpop.f32.mrf.mxu0  ;;  %v3030_v45 = vpop.f32.mrf.mxu1 }
 0x17a   : > { %1604 = vst [vmem:[%s2892_s24 + $0x48] sm:$0xff] %v3025_v38  ;;  %1606 = vst [vmem:[%s2892_s24 + $0x58] sm:$0xff] %v3030_v45  ;;  %v1798_v34 = vadd.f32 %v1797_v19, %v1735_v22  ;;  %v1736_v46 = vmul.f32 %v3025_v38, %v3025_v38  ;;  %v1667_v25 = vadd.f32 %v1666_v48, %v3025_v38 }
 0x17b   : > { %v3035_v51 = vpop.f32.mrf.mxu0  ;;  %v3039_v47 = vpop.f32.mrf.mxu1  ;;  %v1738_v3 = vmul.f32 %v3030_v45, %v3030_v45 }
 0x17c   : > { %1619 = vst [vmem:[%s2892_s24 + $0xc0] sm:$0xff] %v3035_v51  ;;  %1621 = vst [vmem:[%s2892_s24 + $0xd0] sm:$0xff] %v3039_v47  ;;  %v1751_v35 = vmul.f32 %v3035_v51, %v3035_v51  ;;  %v1683_v23 = vadd.f32 %v1682_v36, %v3035_v51  ;;  %v1799_v57 = vadd.f32 %v1798_v34, %v1736_v46 }
 0x17d   : > { %v3043_v58 = vpop.f32.mrf.mxu0  ;;  %v3049_v60 = vpop.f32.mrf.mxu1  ;;  %v1847_v51 = vadd.f32 %v1846_v42, %v1781_v37  ;;  %v1668_v61 = vadd.f32 %v1667_v25, %v3021_v54  ;;  %v1753_v5 = vmul.f32 %v3039_v47, %v3039_v47 }
 0x17e   : > { %1620 = vst [vmem:[%s2892_s24 + $0xc8] sm:$0xff] %v3043_v58  ;;  %1622 = vst [vmem:[%s2892_s24 + $0xd8] sm:$0xff] %v3049_v60  ;;  %v1815_v30 = vadd.f32 %v1814_v43, %v1751_v35  ;;  %v1752_v41 = vmul.f32 %v3043_v58, %v3043_v58  ;;  %v1684_v38 = vadd.f32 %v1683_v23, %v3043_v58 }
 0x17f   : > { %v1427_v63 = vpop.f32.mrf.mxu0  ;;  %v3056_v2 = vpop.f32.mrf.mxu1  ;;  %v1800_v4 = vadd.f32 %v1799_v57, %v1737_v56  ;;  %v1848_v58 = vadd.f32 %v1847_v51, %v1782_v55  ;;  %v1669_v31 = vadd.f32 %v1668_v61, %v3030_v45  ;;  %v1754_v22 = vmul.f32 %v3049_v60, %v3049_v60 }
 0x180   : > { %1635 = vst [vmem:[%s2892_s24 + $0x140] sm:$0xff] %v1427_v63  ;;  %1637 = vst [vmem:[%s2892_s24 + $0x150] sm:$0xff] %v3056_v2  ;;  %v1767_v52 = vmul.f32 %v1427_v63, %v1427_v63  ;;  %v1700_v59 = vadd.f32 %v1699_v49, %v1427_v63  ;;  %v1816_v62 = vadd.f32 %v1815_v30, %v1752_v41 }
 0x181   : > { %v3063_v6 = vpop.f32.mrf.mxu0  ;;  %v3073_v10 = vpop.f32.mrf.mxu1  ;;  %v1685_v63 = vadd.f32 %v1684_v38, %v3039_v47  ;;  %v1769_v13 = vmul.f32 %v3056_v2, %v3056_v2  ;;  %v1801_v20 = vadd.f32 %v1800_v4, %v1738_v3 }
 0x182   : > { %1636 = vst [vmem:[%s2892_s24 + $0x148] sm:$0xff] %v3063_v6  ;;  %1638 = vst [vmem:[%s2892_s24 + $0x158] sm:$0xff] %v3073_v10  ;;  %v1832_v0 = vadd.f32 %v1831_v53, %v1767_v52  ;;  %v1768_v29 = vmul.f32 %v3063_v6, %v3063_v6  ;;  %v1701_v54 = vadd.f32 %v1700_v59, %v3063_v6 }
 0x183   : > { %v1431_v17 = vpop.f32.mrf.mxu0  ;;  %v3085_v24 = vpop.f32.mrf.mxu1  ;;  %v1817_v8 = vadd.f32 %v1816_v62, %v1753_v5  ;;  %v1686_v45 = vadd.f32 %v1685_v63, %v3049_v60  ;;  %v1770_v14 = vmul.f32 %v3073_v10, %v3073_v10 }
 0x184   : > { %1651 = vst [vmem:[%s2892_s24 + $0x1c0] sm:$0xff] %v1431_v17  ;;  %1653 = vst [vmem:[%s2892_s24 + $0x1d0] sm:$0xff] %v3085_v24  ;;  %v1783_v1 = vmul.f32 %v1431_v17, %v1431_v17  ;;  %v1717_v7 = vadd.f32 %v1716_v27, %v1431_v17  ;;  %v1833_v11 = vadd.f32 %v1832_v0, %v1768_v29 }
 0x185   : > { %v1433_v32 = vpop.f32.mrf.mxu0  ;;  %v3100_v15 = vpop.f32.mrf.mxu1  ;;  %v1702_v21 = vadd.f32 %v1701_v54, %v3056_v2  ;;  %v1818_v19 = vadd.f32 %v1817_v8, %v1754_v22  ;;  %v1785_v60 = vmul.f32 %v3085_v24, %v3085_v24 }
 0x186   : > { %1652 = vst [vmem:[%s2892_s24 + $0x1c8] sm:$0xff] %v1433_v32  ;;  %1654 = vst [vmem:[%s2892_s24 + $0x1d8] sm:$0xff] %v3100_v15  ;;  %v1849_v12 = vadd.f32 %v1848_v58, %v1783_v1  ;;  %v1784_v16 = vmul.f32 %v1433_v32, %v1433_v32  ;;  %v1718_v26 = vadd.f32 %v1717_v7, %v1433_v32 }
 0x187   : > { %v1834_v39 = vadd.f32 %v1833_v11, %v1769_v13  ;;  %v1703_v42 = vadd.f32 %v1702_v21, %v3073_v10  ;;  %v1786_v23 = vmul.f32 %v3100_v15, %v3100_v15 }
 0x188   : > { %v1850_v40 = vadd.f32 %v1849_v12, %v1784_v16  ;;  %v1719_v37 = vadd.f32 %v1718_v26, %v3085_v24 }
 0x189   : > { %v1835_v55 = vadd.f32 %v1834_v39, %v1770_v14 }
 0x18a   : > { %v1851_v56 = vadd.f32 %v1850_v40, %v1785_v60  ;;  %v1720_v62 = vadd.f32 %v1719_v37, %v3100_v15 }
 0x18c   : > { %v1852_v54 = vadd.f32 %v1851_v56, %v1786_v23 }
 0x193   : > { %v1523_v18 = vpop.f32.mrf.mxu0  ;;  %v1576_v17 = vpop.f32.mrf.mxu1 }
 0x194   : > { %1607 = vst [vmem:[%s2892_s24 + $0x60] sm:$0xff] %v1523_v18  ;;  %v1670_v47 = vadd.f32 %v1669_v31, %v1523_v18  ;;  %v1739_v6 = vmul.f32 %v1523_v18, %v1523_v18  ;;  %1609 = vst [vmem:[%s2892_s24 + $0x70] sm:$0xff] %v1576_v17  ;;  %v1741_v2 = vmul.f32 %v1576_v17, %v1576_v17 }
 0x195   : > { %v1525_v28 = vpop.f32.mrf.mxu0  ;;  %v1578_v36 = vpop.f32.mrf.mxu1 }
 0x196   : > { %v1802_v33 = vadd.f32 %v1801_v20, %v1739_v6  ;;  %1608 = vst [vmem:[%s2892_s24 + $0x68] sm:$0xff] %v1525_v28  ;;  %v1671_v48 = vadd.f32 %v1670_v47, %v1525_v28  ;;  %v1740_v35 = vmul.f32 %v1525_v28, %v1525_v28  ;;  %1610 = vst [vmem:[%s2892_s24 + $0x78] sm:$0xff] %v1578_v36 }
 0x197   : > { %v1527_v32 = vpop.f32.mrf.mxu0  ;;  %v1580_v34 = vpop.f32.mrf.mxu1  ;;  %v1742_v10 = vmul.f32 %v1578_v36, %v1578_v36 }
 0x198   : > { %1623 = vst [vmem:[%s2892_s24 + $0xe0] sm:$0xff] %v1527_v32  ;;  %v1687_v43 = vadd.f32 %v1686_v45, %v1527_v32  ;;  %v1755_v44 = vmul.f32 %v1527_v32, %v1527_v32  ;;  %v1672_v46 = vadd.f32 %v1671_v48, %v1576_v17  ;;  %v1803_v9 = vadd.f32 %v1802_v33, %v1740_v35 }
 0x199   : > { %1625 = vst [vmem:[%s2892_s24 + $0xf0] sm:$0xff] %v1580_v34  ;;  %v1529_v25 = vpop.f32.mrf.mxu0  ;;  %v1582_v50 = vpop.f32.mrf.mxu1  ;;  %v1757_v53 = vmul.f32 %v1580_v34, %v1580_v34 }
 0x19a   : > { %v1819_v30 = vadd.f32 %v1818_v19, %v1755_v44  ;;  %1624 = vst [vmem:[%s2892_s24 + $0xe8] sm:$0xff] %v1529_v25  ;;  %v1688_v41 = vadd.f32 %v1687_v43, %v1529_v25  ;;  %v1756_v49 = vmul.f32 %v1529_v25, %v1529_v25  ;;  %v1673_v52 = vadd.f32 %v1672_v46, %v1578_v36 }
 0x19b   : > { %1626 = vst [vmem:[%s2892_s24 + $0xf8] sm:$0xff] %v1582_v50  ;;  %v1533_v57 = vpop.f32.mrf.mxu0  ;;  %v1804_v24 = vadd.f32 %v1803_v9, %v1741_v2  ;;  %v1586_v59 = vpop.f32.mrf.mxu1  ;;  %v1758_v29 = vmul.f32 %v1582_v50, %v1582_v50 }
 0x19c   : > { %1639 = vst [vmem:[%s2892_s24 + $0x160] sm:$0xff] %v1533_v57  ;;  %v1704_v51 = vadd.f32 %v1703_v42, %v1533_v57  ;;  %v1771_v38 = vmul.f32 %v1533_v57, %v1533_v57  ;;  %1674 = vadd.xlane.f32.xlu0 %v1673_v52  ;;  %v1820_v61 = vadd.f32 %v1819_v30, %v1756_v49  ;;  %1641 = vst [vmem:[%s2892_s24 + $0x170] sm:$0xff] %v1586_v59 }
 0x19d   : > { %v1535_v27 = vpop.f32.mrf.mxu0  ;;  %v1805_v0 = vadd.f32 %v1804_v24, %v1742_v10  ;;  %v1689_v1 = vadd.f32 %v1688_v41, %v1580_v34  ;;  %v1588_v58 = vpop.f32.mrf.mxu1  ;;  %v1773_v7 = vmul.f32 %v1586_v59, %v1586_v59 }
 0x19e   : > { %v1836_v3 = vadd.f32 %v1835_v55, %v1771_v38  ;;  %1640 = vst [vmem:[%s2892_s24 + $0x168] sm:$0xff] %v1535_v27  ;;  %v1705_v4 = vadd.f32 %v1704_v51, %v1535_v27  ;;  %v1772_v5 = vmul.f32 %v1535_v27, %v1535_v27  ;;  %v1821_v63 = vadd.f32 %v1820_v61, %v1757_v53 }
 0x19f   : > { %1642 = vst [vmem:[%s2892_s24 + $0x178] sm:$0xff] %v1588_v58  ;;  %v1537_v31 = vpop.f32.mrf.mxu0  ;;  %v1590_v11 = vpop.f32.mrf.mxu1  ;;  %v1690_v18 = vadd.f32 %v1689_v1, %v1582_v50  ;;  %v1774_v45 = vmul.f32 %v1588_v58, %v1588_v58 }
 0x1a0   : > { %1655 = vst [vmem:[%s2892_s24 + $0x1e0] sm:$0xff] %v1537_v31  ;;  %v1721_v15 = vadd.f32 %v1720_v62, %v1537_v31  ;;  %v1787_v8 = vmul.f32 %v1537_v31, %v1537_v31  ;;  %1806 = vadd.xlane.f32.xlu0 %v1805_v0  ;;  %v1822_v12 = vadd.f32 %v1821_v63, %v1758_v29  ;;  %1657 = vst [vmem:[%s2892_s24 + $0x1f0] sm:$0xff] %v1590_v11 }
 0x1a1   : > { %v1706_v13 = vadd.f32 %v1705_v4, %v1586_v59  ;;  %v1539_v16 = vpop.f32.mrf.mxu0  ;;  %v1837_v20 = vadd.f32 %v1836_v3, %v1772_v5  ;;  %v1592_v17 = vpop.f32.mrf.mxu1  ;;  %v1789_v19 = vmul.f32 %v1590_v11, %v1590_v11 }
 0x1a2   : > { %v1853_v22 = vadd.f32 %v1852_v54, %v1787_v8  ;;  %1656 = vst [vmem:[%s2892_s24 + $0x1e8] sm:$0xff] %v1539_v16  ;;  %v1722_v47 = vadd.f32 %v1721_v15, %v1539_v16  ;;  %v1788_v6 = vmul.f32 %v1539_v16, %v1539_v16  ;;  %1823 = vadd.xlane.f32.xlu1 %v1822_v12  ;;  %1658 = vst [vmem:[%s2892_s24 + $0x1f8] sm:$0xff] %v1592_v17 }
 0x1a3   : > { %v1838_v21 = vadd.f32 %v1837_v20, %v1773_v7  ;;  %v1707_v14 = vadd.f32 %v1706_v13, %v1588_v58  ;;  %v1790_v36 = vmul.f32 %v1592_v17, %v1592_v17 }
 0x1a4   : > { %v1854_v26 = vadd.f32 %v1853_v22, %v1788_v6  ;;  %1691 = vadd.xlane.f32.xlu0 %v1690_v18  ;;  %v1723_v28 = vadd.f32 %v1722_v47, %v1590_v11 }
 0x1a5   : > { %v1839_v33 = vadd.f32 %v1838_v21, %v1774_v45 }
 0x1a6   : > { %1708 = vadd.xlane.f32.xlu1 %v1707_v14  ;;  %v1724_v48 = vadd.f32 %v1723_v28, %v1592_v17  ;;  %v1855_v35 = vadd.f32 %v1854_v26, %v1789_v19 }
 0x1a8   : > { %1840 = vadd.xlane.f32.xlu0 %v1839_v33  ;;  %v1856_v39 = vadd.f32 %v1855_v35, %v1790_v36 }
 0x1aa   : > { %1725 = vadd.xlane.f32.xlu1 %v1724_v48 }
 0x1ae   : > { %1857 = vadd.xlane.f32.xlu1 %v1856_v39 }
 0x225   : > { %v1675_v40 = vpop.xlane.xlu0 %1674 }
 0x229   : > { %v1807_v60 = vpop.xlane.xlu0 %1806 }
 0x22a   : > { %v1860_v2 = vsel %vm1859_vm2, %v1675_v40, %v1807_v60 }
 0x22b   : > { %v1824_v32 = vpop.xlane.xlu1 %1823 }
 0x22d   : > { %v1692_v43 = vpop.xlane.xlu0 %1691 }
 0x22e   : > { %v1861_v44 = vsel %vm1859_vm2, %v1692_v43, %v1824_v32 }
 0x22f   : > { %v1709_v34 = vpop.xlane.xlu1 %1708 }
 0x231   : > { %v1841_v46 = vpop.xlane.xlu0 %1840 }
 0x232   : > { %v1862_v9 = vsel %vm1859_vm2, %v1709_v34, %v1841_v46 }
 0x233   : > { %v1726_v42 = vpop.xlane.xlu1 %1725 }
 0x234   : > { %1867 = sbr.rel (%p2168_p2) target bundleno = 572 (0x23c), region = 55 }
 0x237   : > { %v1858_v37 = vpop.xlane.xlu1 %1857 }
 0x238   : > { %v1863_v23 = vsel %vm1859_vm2, %v1726_v42, %v1858_v37 }
 0x239   : > { %vm1868_vm3 = vcmask 15360   ;;  %v2352_v25 = vmov 0.0  }
 0x23a   : > { %1869 = vst.msk [vmem:[%s2706_s8] sm:$0xff] %vm1868_vm3, %v2352_v25  ;;  %1870 = vst.msk [vmem:[%s2706_s8 + $0x8] sm:$0xff] %vm1868_vm3, %v2352_v25 }
 0x23b   : > { %1871 = vst.msk [vmem:[%s2706_s8 + $0x10] sm:$0xff] %vm1868_vm3, %v2352_v25  ;;  %1872 = vst.msk [vmem:[%s2706_s8 + $0x18] sm:$0xff] %vm1868_vm3, %v2352_v25 }
 0x23c PF: > { %vm1881_vm4 = vcmask 15360   ;;  %s2170_s28 = sshll.u32 %s2333_s15, 4  ;;  %s2171_s29 = sshll.u32 %s2337_s16, 7 }
 0x23d   : > { %s1907_s30 = sshll.u32 %s2892_s24, 4  ;;  %s1904_s5 = sadd.s32 %s2171_s29, %s2170_s28  ;;  %s3178_s30 = int_to_ptr.vmem [resolvable:$true] %s1907_s30 }
 0x23e   : > { %s2172_s15 = sshll.u32 %s1904_s5, 7  ;;  %s1887_s9 = scalar_lea.sflag [#allocation4], %s2691_s25 }
 0x23f   : > { %s3191_s16 = scalar_lea.hbm %s3246_s2, %s2172_s15  ;;  %s2257_s10 = scalar_lea.vmem %s3178_s30, 8192 }
 0x240   : > { %p2258_p3 = scmp.ne.s32.totalorder %s3178_s30, %s2257_s10  ;;  %s2353_s11 = smov [#allocation3]  }
 0x241   : > { %v1873_v30 = vld [vmem:[%s2706_s8] sm:$0xff]  ;;  %v1874_v41 = vld [vmem:[%s2706_s8 + $0x8] sm:$0xff]  ;;  %s2261_s20 = sshll.u32 %s2353_s11, 4  ;;  %s2262_s20 = int_to_ptr.vmem [resolvable:$false] %s2261_s20 }
 0x242   : > { %v1875_v49 = vld [vmem:[%s2706_s8 + $0x10] sm:$0xff]  ;;  %v1877_v50 = vadd.f32 %v1873_v30, %v1860_v2  ;;  %v1878_v52 = vadd.f32 %v1874_v41, %v1861_v44  ;;  %v1876_v56 = vld [vmem:[%s2706_s8 + $0x18] sm:$0xff]  ;;  %p2259_p4 = pnand %p2258_p3, %p2437_p8  ;;  %s2263_s21 = scalar_lea.vmem %s2262_s20, 16384 }
 0x243   : > { %v1879_v55 = vadd.f32 %v1875_v49, %v1862_v9  ;;  %v1880_v57 = vadd.f32 %v1876_v56, %v1863_v23  ;;  %p2264_p6 = scmp.lt.s32.totalorder %s3178_s30, %s2262_s20  ;;  %p2265_p7 = scmp.lt.s32.totalorder %s2263_s21, %s2257_s10 }
 0x244   : > { %1882 = vst.msk [vmem:[%s2706_s8] sm:$0xff] %vm1881_vm4, %v1877_v50  ;;  %1883 = vst.msk [vmem:[%s2706_s8 + $0x8] sm:$0xff] %vm1881_vm4, %v1878_v52  ;;  %p2260_p5 = pneg %p2259_p4 }
 0x245   : > { %1884 = vst.msk [vmem:[%s2706_s8 + $0x10] sm:$0xff] %vm1881_vm4, %v1879_v55  ;;  %1885 = vst.msk [vmem:[%s2706_s8 + $0x18] sm:$0xff] %vm1881_vm4, %v1880_v57  ;;  %p2266_p10 = por %p2265_p7, %p2264_p6 }
 0x247   : > { %p2267_p11 = pnand %p2266_p10, %p2260_p5 }
 0x249   : > { %2270 = shalt.err (!%p2267_p11)
}
 0x24a   : > { %s2271_s8 = scalar_lea.hbm %s3191_s16, 8192  ;;  %s2275_s29 = scalar_lea.hbm %s3246_s2, 32768 }
 0x24b   : > { %p2272_p12 = scmp.ne.s32.totalorder %s3191_s16, %s2271_s8  ;;  %p2276_p1 = scmp.lt.s32.totalorder %s3191_s16, %s3246_s2 }
 0x24c   : > { %p2277_p2 = scmp.lt.s32.totalorder %s2275_s29, %s2271_s8 }
 0x24d   : > { %p2273_p13 = pnand %p2272_p12, %p2437_p8 }
 0x24e   : > { %p2278_p3 = por %p2277_p2, %p2276_p1 }
 0x24f   : > { %p2274_p0 = pneg %p2273_p13 }
 0x251   : > { %p2279_p4 = pnand %p2278_p3, %p2274_p0 }
 0x253   : > { %2282 = shalt.err (!%p2279_p4)
}
 0x254   : > { %s2354_s6 = smov 2048   ;;  %s2355_s7 = smov 4096  }
 0x255   : > { %s2356_s10 = smov 128  }
 0x256   : > { %2179 = dma.vmem_to_hbm [thread:$0]  (%p2437_p8), %s3178_s30, 8192, %s3191_s16, %s1887_s9, %s2354_s6, %s2355_s7, %s2356_s10  }
 0x257 PF: > { %p2185_p5 = scmp.ge.s32.totalorder %s2349_s19, 2  ;;  %s1925_s11 = sand.u32 1, %s2321_s12  }
 0x258   : > { %s1926_s20 = scalar_lea.sflag [#allocation4], %s1925_s11 }
 0x259   : > { %p2182_p6 = pnand %p2185_p5, %p2441_p9 }
 0x25b   : > { %p2183_p7 = pneg %p2182_p6 }
 0x25d   : > { %2316 = dma.done.wait (%p2183_p7), %s1926_s20, 8192  }
 0x25e   : > { %2318 = vsyncadd (%p2183_p7), %s1926_s20, 4294959104  ;;  %s17_s19 = sadd.s32 1, %s2349_s19   ;;  %s3251_s12 = smov %s2325_s13 }
 0x25f   : > { %p14_p10 = scmp.ge.s32.totalorder %s17_s19, 6   ;;  %s3252_s13 = smov %s2329_s14 }
 0x260   : > { %s3253_s14 = smov %s2449_s4  ;;  %s3254_s15 = smov %s2341_s17 }
 0x261   : > { %s3255_s16 = smov %s2345_s18  ;;  %s3256_s17 = smov %s3259_s22 }
 0x262   : > { %s3257_s18 = smov %s3263_s23  ;;  %16 = sbr.rel (!%p14_p10) target bundleno = 5 (0x5), region = 107 }
 0x267   :  { %1939 = vsyncpa [#allocation4], 1 }
 0x268   :  { %1941 = vsyncpa [#allocation4 + $0x1], 1 }

</bundles_post_ra>
